<compile_context>
chip_gen: v5e
topology: v5e:2x2
jax: 0.10.0
libtpu: 0.0.40
codegen_flags: <defaults>
</compile_context>

<pallas_src>
import functools

import jax
import jax.numpy as jnp
from jax.experimental import pallas as pl
from jax.experimental.pallas import tpu as pltpu

HIDDEN = 256          # fixed by the module (fcIn -> 256)
BN_EPS = 1e-5
LANE = 128            # output features padded to a multiple of this (lane-dense store)
TILE_B_MAX = 512      # max batch-rows per grid step (256-512 fills the 256x256 MXU)
VMEM_CAP = 48 << 20   # never request more scoped VMEM than this (v7x physical = 64 MiB)


# ------------------------------- kernel ------------------------------------

def _e2e_kernel(n_blocks, residual, x_ref, win_ref, bin_ref, *rest):
    if n_blocks > 0:
        wblk_ref, bblk_ref, wout_ref, bout_ref, o_ref = rest
    else:
        wout_ref, bout_ref, o_ref = rest

    # (bn0 -> fcIn -> bnIn) folded offline into one matmul + bias, then ReLU.
    # x_ref is already bf16 (cast in the wrapper).
    z = jnp.dot(x_ref[...], win_ref[...], preferred_element_type=jnp.float32)
    z = jnp.maximum(z + bin_ref[...], 0.0)

    # Residual stack (n_blocks is static -> unrolled at trace time).
    for i in range(n_blocks):
        h = jnp.dot(z.astype(jnp.bfloat16), wblk_ref[2 * i],
                    preferred_element_type=jnp.float32)
        h = jnp.maximum(h + bblk_ref[2 * i], 0.0)          # (1,256) bias row: plain vld
        h = jnp.dot(h.astype(jnp.bfloat16), wblk_ref[2 * i + 1],
                    preferred_element_type=jnp.float32)
        h = h + bblk_ref[2 * i + 1]
        if residual:
            h = h + z
        z = jnp.maximum(h, 0.0)

    # fcOut (with bias); lane-dense padded output slab.
    o_ref[...] = (jnp.dot(z.astype(jnp.bfloat16), wout_ref[...],
                          preferred_element_type=jnp.float32)
                  + bout_ref[...])


# ------------------------------- wrapper ------------------------------------

def _choose_tile_b(batch):
    """Row tile: single sublane-aligned tile for small B; for B >= 256 pick a
    128-multiple that yields >= 2 grid steps (v7x megacore), capped at TILE_B_MAX."""
    if batch < 256:
        return max(8, -(-batch // 8) * 8)
    return min(TILE_B_MAX, 128 * max(1, (batch // 2) // 128))


def endtoend_net_pallas(x, params, *, n_blocks, residual, out_features):
    B, in_f = x.shape
    out_pad = params["w_out"].shape[1]
    kernel = functools.partial(_e2e_kernel, n_blocks, residual)

    weight_args = [params["w_in"], params["b_in"]]
    if n_blocks > 0:
        weight_args += [params["w_blk"], params["b_blk"]]
    weight_args += [params["w_out"], params["b_out"]]

    # Always take the batch-tiled grid path: cast x to bf16 and pad rows.
    tile_b = _choose_tile_b(B)
    n_tiles = pl.cdiv(B, tile_b)
    b_pad = n_tiles * tile_b
    x_bf = x.astype(jnp.bfloat16)
    if b_pad != B:
        x_bf = jnp.pad(x_bf, ((0, b_pad - B), (0, 0)))

    # VMEM budget: weights single-buffered (constant block index); x / out tiles
    # are double-buffered by the pipeline; small slack for internal scratch.
    weight_bytes = sum(int(a.size) * a.dtype.itemsize for a in weight_args)
    vmem_est = (weight_bytes
                + 2 * (tile_b * in_f * 2 + tile_b * out_pad * 4)
                + (4 << 20))
    cp_kwargs = {}
    if vmem_est > (14 << 20):                     # v5e default scoped limit ~16 MiB
        cp_kwargs["vmem_limit_bytes"] = int(min(vmem_est + (8 << 20), VMEM_CAP))
        # TODO(synk): beyond ~48 MiB of resident weights, stream w_blk per block
        # (block-index grid axis marked 'arbitrary', z carried in VMEM scratch)
        # instead of keeping the whole stack resident.

    flops = 2 * b_pad * (in_f * HIDDEN
                         + n_blocks * 2 * HIDDEN * HIDDEN
                         + HIDDEN * out_pad)
    cost = pl.CostEstimate(
        flops=int(flops), transcendentals=0,
        bytes_accessed=int(x_bf.size * 2 + weight_bytes + b_pad * out_pad * 4))

    def _call(single_buffer_weights):
        def wspec(a):
            kw = {"pipeline_mode": pl.Buffered(1)} if single_buffer_weights else {}
            return pl.BlockSpec(a.shape, lambda i, _nd=a.ndim: (0,) * _nd, **kw)

        in_specs = [pl.BlockSpec((tile_b, in_f), lambda i: (i, 0))]
        in_specs += [wspec(a) for a in weight_args]
        return pl.pallas_call(
            kernel,
            out_shape=jax.ShapeDtypeStruct((b_pad, out_pad), jnp.float32),
            grid=(n_tiles,),
            in_specs=in_specs,
            out_specs=pl.BlockSpec((tile_b, out_pad), lambda i: (i, 0)),
            compiler_params=pltpu.CompilerParams(
                dimension_semantics=("parallel",), **cp_kwargs),
            cost_estimate=cost,
        )(x_bf, *weight_args)

    try:
        out = _call(single_buffer_weights=True)
    except Exception:
        # Fallback if this jax version rejects pl.Buffered(1) on an input spec:
        # default double buffering (costs 2x weight VMEM, same numerics).
        out = _call(single_buffer_weights=False)

    return out[:B, :out_features]


# ----------------------------- parameters ---------------------------------

def _bn_affine(bn):
    """Eval-mode BatchNorm1d -> per-feature (scale, shift)."""
    scale = bn["gamma"] / jnp.sqrt(bn["var"] + BN_EPS)
    shift = bn["beta"] - bn["mean"] * scale
    return scale, shift


def make_raw_params(key, in_features, out_features, n_blocks):
    """Raw (PyTorch-style) parameters: BN stats/affines + linear weights."""
    def bn(k, f):
        k1, k2, k3, k4 = jax.random.split(k, 4)
        return dict(
            gamma=1.0 + 0.1 * jax.random.normal(k1, (f,), jnp.float32),
            beta=0.1 * jax.random.normal(k2, (f,), jnp.float32),
            mean=0.1 * jax.random.normal(k3, (f,), jnp.float32),
            var=1.0 + 0.1 * jax.random.uniform(k4, (f,), jnp.float32),
        )

    ks = jax.random.split(key, 6)
    raw = {
        "bn0": bn(ks[0], in_features),
        "bnin": bn(ks[1], HIDDEN),
        # nn.Linear(in, out, bias=False) weight is (out, in); stored transposed.
        "w_in": 0.05 * jax.random.normal(ks[2], (in_features, HIDDEN), jnp.float32),
        "blocks": [],
        "w_out": 0.05 * jax.random.normal(ks[4], (HIDDEN, out_features), jnp.float32),
        "b_out": 0.1 * jax.random.normal(ks[5], (out_features,), jnp.float32),
    }
    for i in range(n_blocks):
        kb = jax.random.fold_in(ks[3], i)
        kb1, kb2, kb3, kb4 = jax.random.split(kb, 4)
        raw["blocks"].append(dict(
            w1=0.05 * jax.random.normal(kb1, (HIDDEN, HIDDEN), jnp.float32),
            w2=0.05 * jax.random.normal(kb2, (HIDDEN, HIDDEN), jnp.float32),
            bn1=bn(kb3, HIDDEN),
            bn2=bn(kb4, HIDDEN),
        ))
    return raw


def fold_params(raw):
    """One-time offline fold of BN affines into weights; bf16 weights, f32 biases."""
    s0, t0 = _bn_affine(raw["bn0"])
    sin, tin = _bn_affine(raw["bnin"])

    # y = ((x*s0 + t0) @ Win) * sin + tin == x @ (s0[:,None]*Win*sin) + ((t0@Win)*sin + tin)
    w_in = (s0[:, None] * raw["w_in"]) * sin[None, :]
    b_in = (t0 @ raw["w_in"]) * sin + tin

    w_blk, b_blk = [], []
    for blk in raw["blocks"]:
        s1, b1 = _bn_affine(blk["bn1"])
        s2, b2 = _bn_affine(blk["bn2"])
        w_blk.append(blk["w1"] * s1[None, :]); b_blk.append(b1)
        w_blk.append(blk["w2"] * s2[None, :]); b_blk.append(b2)

    out_f = raw["w_out"].shape[1]
    pad = (-out_f) % LANE                 # lane-dense output slab
    w_out = jnp.pad(raw["w_out"], ((0, 0), (0, pad)))
    b_out = jnp.pad(raw["b_out"], (0, pad))

    params = {
        "w_in": w_in.astype(jnp.bfloat16),
        "b_in": b_in[None, :].astype(jnp.float32),
        "w_out": w_out.astype(jnp.bfloat16),
        "b_out": b_out[None, :].astype(jnp.float32),
    }
    if w_blk:
        params["w_blk"] = jnp.stack(w_blk, 0).astype(jnp.bfloat16)
        params["b_blk"] = jnp.stack(b_blk, 0)[:, None, :].astype(jnp.float32)
    return params


# ----------------------------- reference -----------------------------------

def endtoend_net_ref(x, raw, *, residual):
    """Pure-JAX f32 reference with the original (unfolded) module semantics."""
    s0, t0 = _bn_affine(raw["bn0"])
    sin, tin = _bn_affine(raw["bnin"])
    z = x * s0 + t0
    z = z @ raw["w_in"]
    z = jnp.maximum(z * sin + tin, 0.0)
    for blk in raw["blocks"]:
        s1, b1 = _bn_affine(blk["bn1"])
        s2, b2 = _bn_affine(blk["bn2"])
        h = z @ blk["w1"]
        h = jnp.maximum(h * s1 + b1, 0.0)
        h = h @ blk["w2"]
        h = h * s2 + b2
        if residual:
            h = h + z
        z = jnp.maximum(h, 0.0)
    return z @ raw["w_out"] + raw["b_out"]


if __name__ == "__main__":
    IN_FEATURES, OUT_FEATURES = 32, 8
    RESIDUAL = True

    key = jax.random.PRNGKey(0)
    kx1, kx2, kp, kp0 = jax.random.split(key, 4)

    # --- n_blocks = 2, small batch (single grid step) -----------------------
    N_BLOCKS = 2
    raw = make_raw_params(kp, IN_FEATURES, OUT_FEATURES, N_BLOCKS)
    params = fold_params(raw)

    x_small = jax.random.normal(kx1, (8, IN_FEATURES), jnp.float32)
    out_small = endtoend_net_pallas(x_small, params, n_blocks=N_BLOCKS,
                                    residual=RESIDUAL, out_features=OUT_FEATURES)
    out_small = jax.block_until_ready(out_small)
    ref_small = endtoend_net_ref(x_small, raw, residual=RESIDUAL)
    assert out_small.shape == (8, OUT_FEATURES)
    err = jnp.max(jnp.abs(out_small - ref_small))
    assert jnp.allclose(out_small, ref_small, atol=3e-2, rtol=3e-2), (
        f"small-batch mismatch vs ref, max err {err}")

    # --- n_blocks = 2, non-128-multiple batch (padded, multi-step grid) -----
    x_big = jax.random.normal(kx2, (272, IN_FEATURES), jnp.float32)
    out_big = endtoend_net_pallas(x_big, params, n_blocks=N_BLOCKS,
                                  residual=RESIDUAL, out_features=OUT_FEATURES)
    out_big = jax.block_until_ready(out_big)
    ref_big = endtoend_net_ref(x_big, raw, residual=RESIDUAL)
    assert out_big.shape == (272, OUT_FEATURES)
    err = jnp.max(jnp.abs(out_big - ref_big))
    assert jnp.allclose(out_big, ref_big, atol=3e-2, rtol=3e-2), (
        f"tiled-batch mismatch vs ref, max err {err}")

    # --- n_blocks = 0 (r3m_bc architecture) ---------------------------------
    raw0 = make_raw_params(kp0, IN_FEATURES, OUT_FEATURES, 0)
    params0 = fold_params(raw0)
    out0 = endtoend_net_pallas(x_small, params0, n_blocks=0,
                               residual=RESIDUAL, out_features=OUT_FEATURES)
    out0 = jax.block_until_ready(out0)
    ref0 = endtoend_net_ref(x_small, raw0, residual=RESIDUAL)
    assert jnp.allclose(out0, ref0, atol=3e-2, rtol=3e-2), "n_blocks=0 mismatch vs ref"

    print("KERNEL_OK")
</pallas_src>

<mosaic_0001>
module attributes {stable_mosaic.version = 11 : i64} {
  func.func @_e2e_kernel(%arg0: i32, %arg1: memref<8x32xbf16, #tpu.memory_space<vmem>>, %arg2: memref<32x256xbf16, #tpu.memory_space<vmem>>, %arg3: memref<1x256xf32, #tpu.memory_space<vmem>>, %arg4: memref<4x256x256xbf16, #tpu.memory_space<vmem>>, %arg5: memref<4x1x256xf32, #tpu.memory_space<vmem>>, %arg6: memref<256x128xbf16, #tpu.memory_space<vmem>>, %arg7: memref<1x128xf32, #tpu.memory_space<vmem>>, %arg8: memref<8x128xf32, #tpu.memory_space<vmem>>) attributes {dimension_semantics = [#tpu.dimension_semantics<parallel>], iteration_bounds = array<i64: 1>, scalar_prefetch = 0 : i64, scratch_operands = 0 : i64, tpu.core_type = #tpu.core_type<tc>, window_params = [{transform_indices = @transform_0, window_bounds = array<i64: 8, 32>}, {pipeline_mode = #tpu.pipeline_mode<synchronous>, transform_indices = @transform_1, window_bounds = array<i64: 32, 256>}, {pipeline_mode = #tpu.pipeline_mode<synchronous>, transform_indices = @transform_2, window_bounds = array<i64: 1, 256>}, {pipeline_mode = #tpu.pipeline_mode<synchronous>, transform_indices = @transform_3, window_bounds = array<i64: 4, 256, 256>}, {pipeline_mode = #tpu.pipeline_mode<synchronous>, transform_indices = @transform_4, window_bounds = array<i64: 4, 1, 256>}, {pipeline_mode = #tpu.pipeline_mode<synchronous>, transform_indices = @transform_5, window_bounds = array<i64: 256, 128>}, {pipeline_mode = #tpu.pipeline_mode<synchronous>, transform_indices = @transform_6, window_bounds = array<i64: 1, 128>}, {transform_indices = @transform_7, window_bounds = array<i64: 8, 128>}]} {
    %c0 = arith.constant 0 : index
    %c0_0 = arith.constant 0 : index
    %0 = vector.load %arg1[%c0, %c0_0] : memref<8x32xbf16, #tpu.memory_space<vmem>>, vector<8x32xbf16>
    %c0_1 = arith.constant 0 : index
    %c0_2 = arith.constant 0 : index
    %1 = vector.load %arg2[%c0_1, %c0_2] : memref<32x256xbf16, #tpu.memory_space<vmem>>, vector<32x256xbf16>
    %cst = arith.constant dense<0.000000e+00> : vector<8x256xf32>
    %2 = tpu.matmul %0, %1, %cst {dimension_numbers = #tpu.dot_dimension_numbers<[1], [0], [0], [1], [0, 0, 1, 1], [], []>} : vector<8x32xbf16>, vector<32x256xbf16>, vector<8x256xf32> -> vector<8x256xf32>
    %c0_3 = arith.constant 0 : index
    %c0_4 = arith.constant 0 : index
    %3 = vector.load %arg3[%c0_3, %c0_4] : memref<1x256xf32, #tpu.memory_space<vmem>>, vector<1x256xf32>
    %4 = vector.broadcast %3 : vector<1x256xf32> to vector<8x256xf32>
    %5 = arith.addf %2, %4 : vector<8x256xf32>
    %cst_5 = arith.constant 0.000000e+00 : f32
    %6 = vector.broadcast %cst_5 : f32 to vector<8x256xf32>
    %7 = arith.maximumf %5, %6 : vector<8x256xf32>
    %8 = arith.truncf %7 : vector<8x256xf32> to vector<8x256xbf16>
    %c0_6 = arith.constant 0 : index
    %c0_7 = arith.constant 0 : index
    %c0_8 = arith.constant 0 : index
    %9 = vector.load %arg4[%c0_6, %c0_7, %c0_8] : memref<4x256x256xbf16, #tpu.memory_space<vmem>>, vector<1x256x256xbf16>
    %10 = vector.shape_cast %9 : vector<1x256x256xbf16> to vector<256x256xbf16>
    %cst_9 = arith.constant dense<0.000000e+00> : vector<8x256xf32>
    %11 = tpu.matmul %8, %10, %cst_9 {dimension_numbers = #tpu.dot_dimension_numbers<[1], [0], [0], [1], [0, 0, 1, 1], [], []>} : vector<8x256xbf16>, vector<256x256xbf16>, vector<8x256xf32> -> vector<8x256xf32>
    %c0_10 = arith.constant 0 : index
    %c0_11 = arith.constant 0 : index
    %c0_12 = arith.constant 0 : index
    %12 = vector.load %arg5[%c0_10, %c0_11, %c0_12] : memref<4x1x256xf32, #tpu.memory_space<vmem>>, vector<1x1x256xf32>
    %13 = vector.shape_cast %12 : vector<1x1x256xf32> to vector<1x256xf32>
    %14 = vector.broadcast %13 : vector<1x256xf32> to vector<8x256xf32>
    %15 = arith.addf %11, %14 : vector<8x256xf32>
    %cst_13 = arith.constant 0.000000e+00 : f32
    %16 = vector.broadcast %cst_13 : f32 to vector<8x256xf32>
    %17 = arith.maximumf %15, %16 : vector<8x256xf32>
    %18 = arith.truncf %17 : vector<8x256xf32> to vector<8x256xbf16>
    %c1 = arith.constant 1 : index
    %c0_14 = arith.constant 0 : index
    %c0_15 = arith.constant 0 : index
    %19 = vector.load %arg4[%c1, %c0_14, %c0_15] : memref<4x256x256xbf16, #tpu.memory_space<vmem>>, vector<1x256x256xbf16>
    %20 = vector.shape_cast %19 : vector<1x256x256xbf16> to vector<256x256xbf16>
    %cst_16 = arith.constant dense<0.000000e+00> : vector<8x256xf32>
    %21 = tpu.matmul %18, %20, %cst_16 {dimension_numbers = #tpu.dot_dimension_numbers<[1], [0], [0], [1], [0, 0, 1, 1], [], []>} : vector<8x256xbf16>, vector<256x256xbf16>, vector<8x256xf32> -> vector<8x256xf32>
    %c1_17 = arith.constant 1 : index
    %c0_18 = arith.constant 0 : index
    %c0_19 = arith.constant 0 : index
    %22 = vector.load %arg5[%c1_17, %c0_18, %c0_19] : memref<4x1x256xf32, #tpu.memory_space<vmem>>, vector<1x1x256xf32>
    %23 = vector.shape_cast %22 : vector<1x1x256xf32> to vector<1x256xf32>
    %24 = vector.broadcast %23 : vector<1x256xf32> to vector<8x256xf32>
    %25 = arith.addf %21, %24 : vector<8x256xf32>
    %26 = arith.addf %25, %7 : vector<8x256xf32>
    %cst_20 = arith.constant 0.000000e+00 : f32
    %27 = vector.broadcast %cst_20 : f32 to vector<8x256xf32>
    %28 = arith.maximumf %26, %27 : vector<8x256xf32>
    %29 = arith.truncf %28 : vector<8x256xf32> to vector<8x256xbf16>
    %c2 = arith.constant 2 : index
    %c0_21 = arith.constant 0 : index
    %c0_22 = arith.constant 0 : index
    %30 = vector.load %arg4[%c2, %c0_21, %c0_22] : memref<4x256x256xbf16, #tpu.memory_space<vmem>>, vector<1x256x256xbf16>
    %31 = vector.shape_cast %30 : vector<1x256x256xbf16> to vector<256x256xbf16>
    %cst_23 = arith.constant dense<0.000000e+00> : vector<8x256xf32>
    %32 = tpu.matmul %29, %31, %cst_23 {dimension_numbers = #tpu.dot_dimension_numbers<[1], [0], [0], [1], [0, 0, 1, 1], [], []>} : vector<8x256xbf16>, vector<256x256xbf16>, vector<8x256xf32> -> vector<8x256xf32>
    %c2_24 = arith.constant 2 : index
    %c0_25 = arith.constant 0 : index
    %c0_26 = arith.constant 0 : index
    %33 = vector.load %arg5[%c2_24, %c0_25, %c0_26] : memref<4x1x256xf32, #tpu.memory_space<vmem>>, vector<1x1x256xf32>
    %34 = vector.shape_cast %33 : vector<1x1x256xf32> to vector<1x256xf32>
    %35 = vector.broadcast %34 : vector<1x256xf32> to vector<8x256xf32>
    %36 = arith.addf %32, %35 : vector<8x256xf32>
    %cst_27 = arith.constant 0.000000e+00 : f32
    %37 = vector.broadcast %cst_27 : f32 to vector<8x256xf32>
    %38 = arith.maximumf %36, %37 : vector<8x256xf32>
    %39 = arith.truncf %38 : vector<8x256xf32> to vector<8x256xbf16>
    %c3 = arith.constant 3 : index
    %c0_28 = arith.constant 0 : index
    %c0_29 = arith.constant 0 : index
    %40 = vector.load %arg4[%c3, %c0_28, %c0_29] : memref<4x256x256xbf16, #tpu.memory_space<vmem>>, vector<1x256x256xbf16>
    %41 = vector.shape_cast %40 : vector<1x256x256xbf16> to vector<256x256xbf16>
    %cst_30 = arith.constant dense<0.000000e+00> : vector<8x256xf32>
    %42 = tpu.matmul %39, %41, %cst_30 {dimension_numbers = #tpu.dot_dimension_numbers<[1], [0], [0], [1], [0, 0, 1, 1], [], []>} : vector<8x256xbf16>, vector<256x256xbf16>, vector<8x256xf32> -> vector<8x256xf32>
    %c3_31 = arith.constant 3 : index
    %c0_32 = arith.constant 0 : index
    %c0_33 = arith.constant 0 : index
    %43 = vector.load %arg5[%c3_31, %c0_32, %c0_33] : memref<4x1x256xf32, #tpu.memory_space<vmem>>, vector<1x1x256xf32>
    %44 = vector.shape_cast %43 : vector<1x1x256xf32> to vector<1x256xf32>
    %45 = vector.broadcast %44 : vector<1x256xf32> to vector<8x256xf32>
    %46 = arith.addf %42, %45 : vector<8x256xf32>
    %47 = arith.addf %46, %28 : vector<8x256xf32>
    %cst_34 = arith.constant 0.000000e+00 : f32
    %48 = vector.broadcast %cst_34 : f32 to vector<8x256xf32>
    %49 = arith.maximumf %47, %48 : vector<8x256xf32>
    %50 = arith.truncf %49 : vector<8x256xf32> to vector<8x256xbf16>
    %c0_35 = arith.constant 0 : index
    %c0_36 = arith.constant 0 : index
    %51 = vector.load %arg6[%c0_35, %c0_36] : memref<256x128xbf16, #tpu.memory_space<vmem>>, vector<256x128xbf16>
    %cst_37 = arith.constant dense<0.000000e+00> : vector<8x128xf32>
    %52 = tpu.matmul %50, %51, %cst_37 {dimension_numbers = #tpu.dot_dimension_numbers<[1], [0], [0], [1], [0, 0, 1, 1], [], []>} : vector<8x256xbf16>, vector<256x128xbf16>, vector<8x128xf32> -> vector<8x128xf32>
    %c0_38 = arith.constant 0 : index
    %c0_39 = arith.constant 0 : index
    %53 = vector.load %arg7[%c0_38, %c0_39] : memref<1x128xf32, #tpu.memory_space<vmem>>, vector<1x128xf32>
    %54 = vector.broadcast %53 : vector<1x128xf32> to vector<8x128xf32>
    %55 = arith.addf %52, %54 : vector<8x128xf32>
    %c0_40 = arith.constant 0 : index
    %c0_41 = arith.constant 0 : index
    %56 = vector.load %arg8[%c0_40, %c0_41] : memref<8x128xf32, #tpu.memory_space<vmem>>, vector<8x128xf32>
    tpu.vector_store %arg8[%c0_40, %c0_41], %55 {strides = array<i32>} : memref<8x128xf32, #tpu.memory_space<vmem>>, vector<8x128xf32>,
    return
  }
  func.func @transform_0(%arg0: i32) -> (i32, i32) {
    %c0_i32 = arith.constant 0 : i32
    %c0_i32_0 = arith.constant 0 : i32
    return %arg0, %c0_i32 : i32, i32
  }
  func.func @transform_1(%arg0: i32) -> (i32, i32) {
    %c0_i32 = arith.constant 0 : i32
    %c0_i32_0 = arith.constant 0 : i32
    %c0_i32_1 = arith.constant 0 : i32
    return %c0_i32, %c0_i32_0 : i32, i32
  }
  func.func @transform_2(%arg0: i32) -> (i32, i32) {
    %c0_i32 = arith.constant 0 : i32
    %c0_i32_0 = arith.constant 0 : i32
    %c0_i32_1 = arith.constant 0 : i32
    return %c0_i32, %c0_i32_0 : i32, i32
  }
  func.func @transform_3(%arg0: i32) -> (i32, i32, i32) {
    %c0_i32 = arith.constant 0 : i32
    %c0_i32_0 = arith.constant 0 : i32
    %c0_i32_1 = arith.constant 0 : i32
    %c0_i32_2 = arith.constant 0 : i32
    return %c0_i32, %c0_i32_0, %c0_i32_1 : i32, i32, i32
  }
  func.func @transform_4(%arg0: i32) -> (i32, i32, i32) {
    %c0_i32 = arith.constant 0 : i32
    %c0_i32_0 = arith.constant 0 : i32
    %c0_i32_1 = arith.constant 0 : i32
    %c0_i32_2 = arith.constant 0 : i32
    return %c0_i32, %c0_i32_0, %c0_i32_1 : i32, i32, i32
  }
  func.func @transform_5(%arg0: i32) -> (i32, i32) {
    %c0_i32 = arith.constant 0 : i32
    %c0_i32_0 = arith.constant 0 : i32
    %c0_i32_1 = arith.constant 0 : i32
    return %c0_i32, %c0_i32_0 : i32, i32
  }
  func.func @transform_6(%arg0: i32) -> (i32, i32) {
    %c0_i32 = arith.constant 0 : i32
    %c0_i32_0 = arith.constant 0 : i32
    %c0_i32_1 = arith.constant 0 : i32
    return %c0_i32, %c0_i32_0 : i32, i32
  }
  func.func @transform_7(%arg0: i32) -> (i32, i32) {
    %c0_i32 = arith.constant 0 : i32
    %c0_i32_0 = arith.constant 0 : i32
    return %arg0, %c0_i32 : i32, i32
  }
}

module attributes {stable_mosaic.version = 11 : i64} {
  func.func @_e2e_kernel(%arg0: i32, %arg1: memref<8x32xbf16, #tpu.memory_space<vmem>>, %arg2: memref<32x256xbf16, #tpu.memory_space<vmem>>, %arg3: memref<1x256xf32, #tpu.memory_space<vmem>>, %arg4: memref<4x256x256xbf16, #tpu.memory_space<vmem>>, %arg5: memref<4x1x256xf32, #tpu.memory_space<vmem>>, %arg6: memref<256x128xbf16, #tpu.memory_space<vmem>>, %arg7: memref<1x128xf32, #tpu.memory_space<vmem>>, %arg8: memref<8x128xf32, #tpu.memory_space<vmem>>) attributes {dimension_semantics = [#tpu.dimension_semantics<parallel>], iteration_bounds = array<i64: 1>, scalar_prefetch = 0 : i64, scratch_operands = 0 : i64, tpu.core_type = #tpu.core_type<tc>, window_params = [{transform_indices = @transform_0, window_bounds = array<i64: 8, 32>}, {pipeline_mode = #tpu.pipeline_mode<synchronous>, transform_indices = @transform_1, window_bounds = array<i64: 32, 256>}, {pipeline_mode = #tpu.pipeline_mode<synchronous>, transform_indices = @transform_2, window_bounds = array<i64: 1, 256>}, {pipeline_mode = #tpu.pipeline_mode<synchronous>, transform_indices = @transform_3, window_bounds = array<i64: 4, 256, 256>}, {pipeline_mode = #tpu.pipeline_mode<synchronous>, transform_indices = @transform_4, window_bounds = array<i64: 4, 1, 256>}, {pipeline_mode = #tpu.pipeline_mode<synchronous>, transform_indices = @transform_5, window_bounds = array<i64: 256, 128>}, {pipeline_mode = #tpu.pipeline_mode<synchronous>, transform_indices = @transform_6, window_bounds = array<i64: 1, 128>}, {transform_indices = @transform_7, window_bounds = array<i64: 8, 128>}]} {
    %c0 = arith.constant 0 : index
    %c0_0 = arith.constant 0 : index
    %0 = vector.load %arg1[%c0, %c0_0] : memref<8x32xbf16, #tpu.memory_space<vmem>>, vector<8x32xbf16>
    %c0_1 = arith.constant 0 : index
    %c0_2 = arith.constant 0 : index
    %1 = vector.load %arg2[%c0_1, %c0_2] : memref<32x256xbf16, #tpu.memory_space<vmem>>, vector<32x256xbf16>
    %cst = arith.constant dense<0.000000e+00> : vector<8x256xf32>
    %2 = tpu.matmul %0, %1, %cst {dimension_numbers = #tpu.dot_dimension_numbers<[1], [0], [0], [1], [0, 0, 1, 1], [], []>} : vector<8x32xbf16>, vector<32x256xbf16>, vector<8x256xf32> -> vector<8x256xf32>
    %c0_3 = arith.constant 0 : index
    %c0_4 = arith.constant 0 : index
    %3 = vector.load %arg3[%c0_3, %c0_4] : memref<1x256xf32, #tpu.memory_space<vmem>>, vector<1x256xf32>
    %4 = vector.broadcast %3 : vector<1x256xf32> to vector<8x256xf32>
    %5 = arith.addf %2, %4 : vector<8x256xf32>
    %cst_5 = arith.constant 0.000000e+00 : f32
    %6 = vector.broadcast %cst_5 : f32 to vector<8x256xf32>
    %7 = arith.maximumf %5, %6 : vector<8x256xf32>
    %8 = arith.truncf %7 : vector<8x256xf32> to vector<8x256xbf16>
    %c0_6 = arith.constant 0 : index
    %c0_7 = arith.constant 0 : index
    %c0_8 = arith.constant 0 : index
    %9 = vector.load %arg4[%c0_6, %c0_7, %c0_8] : memref<4x256x256xbf16, #tpu.memory_space<vmem>>, vector<1x256x256xbf16>
    %10 = vector.shape_cast %9 : vector<1x256x256xbf16> to vector<256x256xbf16>
    %cst_9 = arith.constant dense<0.000000e+00> : vector<8x256xf32>
    %11 = tpu.matmul %8, %10, %cst_9 {dimension_numbers = #tpu.dot_dimension_numbers<[1], [0], [0], [1], [0, 0, 1, 1], [], []>} : vector<8x256xbf16>, vector<256x256xbf16>, vector<8x256xf32> -> vector<8x256xf32>
    %c0_10 = arith.constant 0 : index
    %c0_11 = arith.constant 0 : index
    %c0_12 = arith.constant 0 : index
    %12 = vector.load %arg5[%c0_10, %c0_11, %c0_12] : memref<4x1x256xf32, #tpu.memory_space<vmem>>, vector<1x1x256xf32>
    %13 = vector.shape_cast %12 : vector<1x1x256xf32> to vector<1x256xf32>
    %14 = vector.broadcast %13 : vector<1x256xf32> to vector<8x256xf32>
    %15 = arith.addf %11, %14 : vector<8x256xf32>
    %cst_13 = arith.constant 0.000000e+00 : f32
    %16 = vector.broadcast %cst_13 : f32 to vector<8x256xf32>
    %17 = arith.maximumf %15, %16 : vector<8x256xf32>
    %18 = arith.truncf %17 : vector<8x256xf32> to vector<8x256xbf16>
    %c1 = arith.constant 1 : index
    %c0_14 = arith.constant 0 : index
    %c0_15 = arith.constant 0 : index
    %19 = vector.load %arg4[%c1, %c0_14, %c0_15] : memref<4x256x256xbf16, #tpu.memory_space<vmem>>, vector<1x256x256xbf16>
    %20 = vector.shape_cast %19 : vector<1x256x256xbf16> to vector<256x256xbf16>
    %cst_16 = arith.constant dense<0.000000e+00> : vector<8x256xf32>
    %21 = tpu.matmul %18, %20, %cst_16 {dimension_numbers = #tpu.dot_dimension_numbers<[1], [0], [0], [1], [0, 0, 1, 1], [], []>} : vector<8x256xbf16>, vector<256x256xbf16>, vector<8x256xf32> -> vector<8x256xf32>
    %c1_17 = arith.constant 1 : index
    %c0_18 = arith.constant 0 : index
    %c0_19 = arith.constant 0 : index
    %22 = vector.load %arg5[%c1_17, %c0_18, %c0_19] : memref<4x1x256xf32, #tpu.memory_space<vmem>>, vector<1x1x256xf32>
    %23 = vector.shape_cast %22 : vector<1x1x256xf32> to vector<1x256xf32>
    %24 = vector.broadcast %23 : vector<1x256xf32> to vector<8x256xf32>
    %25 = arith.addf %21, %24 : vector<8x256xf32>
    %26 = arith.addf %25, %7 : vector<8x256xf32>
    %cst_20 = arith.constant 0.000000e+00 : f32
    %27 = vector.broadcast %cst_20 : f32 to vector<8x256xf32>
    %28 = arith.maximumf %26, %27 : vector<8x256xf32>
    %29 = arith.truncf %28 : vector<8x256xf32> to vector<8x256xbf16>
    %c2 = arith.constant 2 : index
    %c0_21 = arith.constant 0 : index
    %c0_22 = arith.constant 0 : index
    %30 = vector.load %arg4[%c2, %c0_21, %c0_22] : memref<4x256x256xbf16, #tpu.memory_space<vmem>>, vector<1x256x256xbf16>
    %31 = vector.shape_cast %30 : vector<1x256x256xbf16> to vector<256x256xbf16>
    %cst_23 = arith.constant dense<0.000000e+00> : vector<8x256xf32>
    %32 = tpu.matmul %29, %31, %cst_23 {dimension_numbers = #tpu.dot_dimension_numbers<[1], [0], [0], [1], [0, 0, 1, 1], [], []>} : vector<8x256xbf16>, vector<256x256xbf16>, vector<8x256xf32> -> vector<8x256xf32>
    %c2_24 = arith.constant 2 : index
    %c0_25 = arith.constant 0 : index
    %c0_26 = arith.constant 0 : index
    %33 = vector.load %arg5[%c2_24, %c0_25, %c0_26] : memref<4x1x256xf32, #tpu.memory_space<vmem>>, vector<1x1x256xf32>
    %34 = vector.shape_cast %33 : vector<1x1x256xf32> to vector<1x256xf32>
    %35 = vector.broadcast %34 : vector<1x256xf32> to vector<8x256xf32>
    %36 = arith.addf %32, %35 : vector<8x256xf32>
    %cst_27 = arith.constant 0.000000e+00 : f32
    %37 = vector.broadcast %cst_27 : f32 to vector<8x256xf32>
    %38 = arith.maximumf %36, %37 : vector<8x256xf32>
    %39 = arith.truncf %38 : vector<8x256xf32> to vector<8x256xbf16>
    %c3 = arith.constant 3 : index
    %c0_28 = arith.constant 0 : index
    %c0_29 = arith.constant 0 : index
    %40 = vector.load %arg4[%c3, %c0_28, %c0_29] : memref<4x256x256xbf16, #tpu.memory_space<vmem>>, vector<1x256x256xbf16>
    %41 = vector.shape_cast %40 : vector<1x256x256xbf16> to vector<256x256xbf16>
    %cst_30 = arith.constant dense<0.000000e+00> : vector<8x256xf32>
    %42 = tpu.matmul %39, %41, %cst_30 {dimension_numbers = #tpu.dot_dimension_numbers<[1], [0], [0], [1], [0, 0, 1, 1], [], []>} : vector<8x256xbf16>, vector<256x256xbf16>, vector<8x256xf32> -> vector<8x256xf32>
    %c3_31 = arith.constant 3 : index
    %c0_32 = arith.constant 0 : index
    %c0_33 = arith.constant 0 : index
    %43 = vector.load %arg5[%c3_31, %c0_32, %c0_33] : memref<4x1x256xf32, #tpu.memory_space<vmem>>, vector<1x1x256xf32>
    %44 = vector.shape_cast %43 : vector<1x1x256xf32> to vector<1x256xf32>
    %45 = vector.broadcast %44 : vector<1x256xf32> to vector<8x256xf32>
    %46 = arith.addf %42, %45 : vector<8x256xf32>
    %47 = arith.addf %46, %28 : vector<8x256xf32>
    %cst_34 = arith.constant 0.000000e+00 : f32
    %48 = vector.broadcast %cst_34 : f32 to vector<8x256xf32>
    %49 = arith.maximumf %47, %48 : vector<8x256xf32>
    %50 = arith.truncf %49 : vector<8x256xf32> to vector<8x256xbf16>
    %c0_35 = arith.constant 0 : index
    %c0_36 = arith.constant 0 : index
    %51 = vector.load %arg6[%c0_35, %c0_36] : memref<256x128xbf16, #tpu.memory_space<vmem>>, vector<256x128xbf16>
    %cst_37 = arith.constant dense<0.000000e+00> : vector<8x128xf32>
    %52 = tpu.matmul %50, %51, %cst_37 {dimension_numbers = #tpu.dot_dimension_numbers<[1], [0], [0], [1], [0, 0, 1, 1], [], []>} : vector<8x256xbf16>, vector<256x128xbf16>, vector<8x128xf32> -> vector<8x128xf32>
    %c0_38 = arith.constant 0 : index
    %c0_39 = arith.constant 0 : index
    %53 = vector.load %arg7[%c0_38, %c0_39] : memref<1x128xf32, #tpu.memory_space<vmem>>, vector<1x128xf32>
    %54 = vector.broadcast %53 : vector<1x128xf32> to vector<8x128xf32>
    %55 = arith.addf %52, %54 : vector<8x128xf32>
    %c0_40 = arith.constant 0 : index
    %c0_41 = arith.constant 0 : index
    %56 = vector.load %arg8[%c0_40, %c0_41] : memref<8x128xf32, #tpu.memory_space<vmem>>, vector<8x128xf32>
    tpu.vector_store %arg8[%c0_40, %c0_41], %55 {strides = array<i32>} : memref<8x128xf32, #tpu.memory_space<vmem>>, vector<8x128xf32>,
    return
  }
  func.func @transform_0(%arg0: i32) -> (i32, i32) {
    %c0_i32 = arith.constant 0 : i32
    %c0_i32_0 = arith.constant 0 : i32
    return %arg0, %c0_i32 : i32, i32
  }
  func.func @transform_1(%arg0: i32) -> (i32, i32) {
    %c0_i32 = arith.constant 0 : i32
    %c0_i32_0 = arith.constant 0 : i32
    %c0_i32_1 = arith.constant 0 : i32
    return %c0_i32, %c0_i32_0 : i32, i32
  }
  func.func @transform_2(%arg0: i32) -> (i32, i32) {
    %c0_i32 = arith.constant 0 : i32
    %c0_i32_0 = arith.constant 0 : i32
    %c0_i32_1 = arith.constant 0 : i32
    return %c0_i32, %c0_i32_0 : i32, i32
  }
  func.func @transform_3(%arg0: i32) -> (i32, i32, i32) {
    %c0_i32 = arith.constant 0 : i32
    %c0_i32_0 = arith.constant 0 : i32
    %c0_i32_1 = arith.constant 0 : i32
    %c0_i32_2 = arith.constant 0 : i32
    return %c0_i32, %c0_i32_0, %c0_i32_1 : i32, i32, i32
  }
  func.func @transform_4(%arg0: i32) -> (i32, i32, i32) {
    %c0_i32 = arith.constant 0 : i32
    %c0_i32_0 = arith.constant 0 : i32
    %c0_i32_1 = arith.constant 0 : i32
    %c0_i32_2 = arith.constant 0 : i32
    return %c0_i32, %c0_i32_0, %c0_i32_1 : i32, i32, i32
  }
  func.func @transform_5(%arg0: i32) -> (i32, i32) {
    %c0_i32 = arith.constant 0 : i32
    %c0_i32_0 = arith.constant 0 : i32
    %c0_i32_1 = arith.constant 0 : i32
    return %c0_i32, %c0_i32_0 : i32, i32
  }
  func.func @transform_6(%arg0: i32) -> (i32, i32) {
    %c0_i32 = arith.constant 0 : i32
    %c0_i32_0 = arith.constant 0 : i32
    %c0_i32_1 = arith.constant 0 : i32
    return %c0_i32, %c0_i32_0 : i32, i32
  }
  func.func @transform_7(%arg0: i32) -> (i32, i32) {
    %c0_i32 = arith.constant 0 : i32
    %c0_i32_0 = arith.constant 0 : i32
    return %arg0, %c0_i32 : i32, i32
  }
}

</mosaic_0001>

<bundles_post_ra>
// kernel: tpu_custom_call.1
= control target key start
LH: loop header
LB: loop body
LE: loop exit
PB: predicated region body
PF: predicated region fallthrough
CT: control target
= control target key end

     0   :  { %12 = vsyncpa [#allocation3], 0  ;;  %s2421_s0 = inlined_call_operand.hbm [shape: bf16[8,32], index: 0, kind: input, shape index: {}]   ;;  %s2422_s1 = inlined_call_operand.hbm [shape: bf16[32,256], index: 1, kind: input, shape index: {}]   ;;  %s2423_s2 = inlined_call_operand.hbm [shape: f32[1,256], index: 2, kind: input, shape index: {}]   ;;  %s2424_s3 = inlined_call_operand.hbm [shape: bf16[4,256,256], index: 3, kind: input, shape index: {}]   ;;  %s2425_s4 = inlined_call_operand.hbm [shape: f32[4,1,256], index: 4, kind: input, shape index: {}]   ;;  %s2426_s5 = inlined_call_operand.hbm [shape: bf16[256,128], index: 5, kind: input, shape index: {}]   ;;  %s2427_s6 = inlined_call_operand.vmem [shape: f32[1,128], index: 6, kind: input, shape index: {}]   ;;  %s2428_s7 = inlined_call_operand.hbm [shape: f32[8,128], index: 7, kind: output, shape index: {}]  }
   0x1   :  { %13 = vsyncpa [#allocation6], 0 }
   0x2   :  { %14 = vsyncpa [#allocation9], 0 }
   0x3   :  { %15 = vsyncpa [#allocation12], 0  ;;  %s32_s26 = sshll.u32 %s2422_s1, 4  ;;  %s33_s26 = int_to_ptr.hbm [resolvable:$true] %s32_s26 }
   0x4   :  { %16 = vsyncpa [#allocation4], 0  ;;  %s2322_s27 = smov [#allocation5]   ;;  %s56_s8 = sshll.u32 %s2424_s3, 4  ;;  %s57_s8 = int_to_ptr.hbm [resolvable:$true] %s56_s8 }
   0x5   :  { %s34_s28 = sshll.u32 %s2322_s27, 4  ;;  %s2323_s9 = smov 128   ;;  %s35_s28 = int_to_ptr.vmem [resolvable:$true] %s34_s28 }
   0x6   :  { %s2324_s10 = smov 8   ;;  %s2325_s11 = smov [#allocation8]  }
   0x7   :  { %40 = dma.hbm_to_vmem [thread:$0]  %s33_s26, 512, %s35_s28, [#allocation6], %s2323_s9, %s2323_s9, %s2324_s10  }
   0x8   :  { %s58_s12 = sshll.u32 %s2325_s11, 4  ;;  %s22_s15 = sshll.u32 %s2421_s0, 4  ;;  %s59_s12 = int_to_ptr.vmem [resolvable:$true] %s58_s12  ;;  %s23_s15 = int_to_ptr.hbm [resolvable:$true] %s22_s15 }
   0x9   :  { %64 = dma.hbm_to_vmem [thread:$0]  %s57_s8, 16384, %s59_s12, [#allocation9], %s2323_s9, %s2323_s9, %s2324_s10  }
   0xa   :  { %s46_s17 = sshll.u32 %s2423_s2, 4  ;;  %s2326_s18 = smov [#allocation2]   ;;  %s47_s17 = int_to_ptr.hbm [resolvable:$true] %s46_s17 }
   0xb   :  { %s24_s19 = sshll.u32 %s2326_s18, 4  ;;  %s2327_s3 = smov [#allocation7]   ;;  %s25_s19 = int_to_ptr.vmem [resolvable:$true] %s24_s19 }
   0xc   :  { %27 = dma.hbm_to_vmem [thread:$0]  %s23_s15, 64, %s25_s19, [#allocation3]  }
   0xd   :  { %s48_s20 = sshll.u32 %s2327_s3, 4  ;;  %s69_s23 = sshll.u32 %s2425_s4, 4  ;;  %s49_s20 = int_to_ptr.vmem [resolvable:$true] %s48_s20  ;;  %s70_s23 = int_to_ptr.hbm [resolvable:$true] %s69_s23 }
   0xe   :  { %51 = dma.hbm_to_vmem [thread:$0]  %s47_s17, 32, %s49_s20, [#allocation6]  }
   0xf   :  { %s2328_s0 = smov [#allocation10]   ;;  %s82_s2 = sshll.u32 %s2426_s5, 4  ;;  %s83_s2 = int_to_ptr.hbm [resolvable:$true] %s82_s2 }
  0x10   :  { %s71_s24 = sshll.u32 %s2328_s0, 4  ;;  %s2329_s27 = smov 32   ;;  %s72_s24 = int_to_ptr.vmem [resolvable:$true] %s71_s24 }
  0x11   :  { %s2330_s28 = smov 2   ;;  %s2331_s29 = smov [#allocation11]  }
  0x12   :  { %77 = dma.hbm_to_vmem [thread:$0]  %s70_s23, 128, %s72_s24, [#allocation9], %s2329_s27, %s2329_s27, %s2330_s28  }
  0x13   :  { %s84_s30 = sshll.u32 %s2331_s29, 4  ;;  %s2332_s8 = smov 64   ;;  %s85_s30 = int_to_ptr.vmem [resolvable:$true] %s84_s30 }
  0x14   :  { %s2333_s9 = smov 4  }
  0x15   :  { %90 = dma.hbm_to_vmem [thread:$0]  %s83_s2, 2048, %s85_s30, [#allocation12], %s2332_s8, %s2332_s8, %s2333_s9  }
  0x16   :  { %2312 = dma.done.wait [#allocation3], 64  }
  0x17   :  { %2313 = vsyncadd [#allocation3], 4294967232 }
  0x18   :  { %2314 = dma.done.wait [#allocation6], 544  }
  0x19   :  { %2315 = vsyncadd [#allocation6], 4294966752 }
  0x1a   :  { %2316 = dma.done.wait [#allocation9], 16512  }
  0x1b   :  { %2317 = vsyncadd [#allocation9], 4294950784 }
  0x1c   :  { %2318 = dma.done.wait [#allocation12], 2048  }
  0x1d   :  { %2319 = vsyncadd [#allocation12], 4294965248  ;;  %v1398_v0 = vld [vmem:[#allocation5 + $0x10] sm:$0xf]  ;;  %v1985_v1 = vld [vmem:[#allocation5 + $0x14] sm:$0xf0] }
  0x1e   :  { %v1984_v2 = vld [vmem:[#allocation5 + $0x14] sm:$0xf]  ;;  %v1399_v3 = vor.u32 %v1985_v1, %v1398_v0  ;;  %v1400_v4 = vld [vmem:[#allocation5 + $0x18] sm:$0xf0]  ;;  %v1390_v5 = vld [vmem:[#allocation5] sm:$0xf] }
  0x1f   :  { %v1983_v6 = vld [vmem:[#allocation5 + $0x4] sm:$0xf0]  ;;  %v1403_v7 = vor.u32 %v1984_v2, %v1400_v4  ;;  %v1982_v8 = vld [vmem:[#allocation5 + $0x4] sm:$0xf]  ;;  %v1392_v9 = vld [vmem:[#allocation5 + $0x8] sm:$0xf0] }
  0x20   :  { %vm149_vm0 = vcmask 261120   ;;  %159 = vmatpush.bf16.msra.mxu0 %v1399_v3  ;;  %v1391_v10 = vor.u32 %v1983_v6, %v1390_v5  ;;  %v1464_v11 = vld [vmem:[#allocation8 + $0x70] sm:$0xf]  ;;  %v2001_v12 = vld [vmem:[#allocation8 + $0x74] sm:$0xf0]  ;;  %v1395_v14 = vor.u32 %v1982_v8, %v1392_v9  ;;  %s2334_s10 = smov [#allocation13]  }
  0x21   :  { %v1528_v13 = vld [vmem:[#allocation8 + $0xf0] sm:$0xf]  ;;  %172 = vmatpush.bf16.msra.mxu1 %v1403_v7  ;;  %v1465_v15 = vor.u32 %v2001_v12, %v1464_v11  ;;  %v2017_v16 = vld [vmem:[#allocation8 + $0xf4] sm:$0xf0]  ;;  %v2000_v17 = vld [vmem:[#allocation8 + $0x74] sm:$0xf] }
  0x22   :  { %v1466_v18 = vld [vmem:[#allocation8 + $0x78] sm:$0xf0]  ;;  %v1529_v20 = vor.u32 %v2017_v16, %v1528_v13  ;;  %v2016_v22 = vld [vmem:[#allocation8 + $0xf4] sm:$0xf]  ;;  %v1456_v24 = vld [vmem:[#allocation8 + $0x60] sm:$0xf] }
  0x23   :  { %v118_v19 = vld [vmem:[#allocation2] sm:$0xf]  ;;  %v1469_v21 = vor.u32 %v2000_v17, %v1466_v18  ;;  %381 = vmatpush.bf16.msra.mxu2 %v1465_v15  ;;  %v1999_v26 = vld [vmem:[#allocation8 + $0x64] sm:$0xf0]  ;;  %v1520_v27 = vld [vmem:[#allocation8 + $0xe0] sm:$0xf] }
  0x24   :  { %v1530_v23 = vld [vmem:[#allocation8 + $0xf8] sm:$0xf0]  ;;  %v2015_v28 = vld [vmem:[#allocation8 + $0xe4] sm:$0xf0]  ;;  %160 = vmatpush.bf16.msra.mxu0 %v1391_v10  ;;  %394 = vmatpush.bf16.msra.mxu3 %v1529_v20  ;;  %v1457_v29 = vor.u32 %v1999_v26, %v1456_v24  ;;  %v1998_v31 = vld [vmem:[#allocation8 + $0x64] sm:$0xf] }
  0x25   :  { %v1533_v25 = vor.u32 %v2016_v22, %v1530_v23  ;;  %v1521_v30 = vor.u32 %v2015_v28, %v1520_v27  ;;  %v1458_v32 = vld [vmem:[#allocation8 + $0x68] sm:$0xf0]  ;;  %v2014_v33 = vld [vmem:[#allocation8 + $0xe4] sm:$0xf]  ;;  %173 = vmatpush.bf16.msra.mxu1 %v1395_v14  ;;  %v1448_v36 = vld [vmem:[#allocation8 + $0x50] sm:$0xf] }
  0x26   :  { %v1461_v34 = vor.u32 %v1998_v31, %v1458_v32  ;;  %v1522_v35 = vld [vmem:[#allocation8 + $0xe8] sm:$0xf0]  ;;  %v1997_v37 = vld [vmem:[#allocation8 + $0x54] sm:$0xf0]  ;;  %v1512_v39 = vld [vmem:[#allocation8 + $0xd0] sm:$0xf] }
  0x27   :  { %v1525_v38 = vor.u32 %v2014_v33, %v1522_v35  ;;  %v2013_v40 = vld [vmem:[#allocation8 + $0xd4] sm:$0xf0]  ;;  %v1996_v41 = vld [vmem:[#allocation8 + $0x54] sm:$0xf]  ;;  %1404 = vmatmul.msk.bf16.vlgmr.msra.gmra.mxu0 %vm149_vm0, %v118_v19  ;;  %382 = vmatpush.bf16.msra.mxu2 %v1457_v29  ;;  %v1449_v42 = vor.u32 %v1997_v37, %v1448_v36  ;;  %v1450_v43 = vld [vmem:[#allocation8 + $0x58] sm:$0xf0] }
  0x28   :  { %407 = vmatpush.bf16.msrb.mxu0 %v1469_v21  ;;  %v2012_v44 = vld [vmem:[#allocation8 + $0xd4] sm:$0xf]  ;;  %v1514_v45 = vld [vmem:[#allocation8 + $0xd8] sm:$0xf0]  ;;  %1405 = vmatmul.msk.bf16.vlgmr.msra.gmra.mxu1 %vm149_vm0, %v118_v19  ;;  %v1513_v46 = vor.u32 %v2013_v40, %v1512_v39  ;;  %v1440_v47 = vld [vmem:[#allocation8 + $0x40] sm:$0xf]  ;;  %v1453_v49 = vor.u32 %v1996_v41, %v1450_v43 }
  0x29   :  { %420 = vmatpush.bf16.msrb.mxu1 %v1533_v25  ;;  %395 = vmatpush.bf16.msra.mxu3 %v1521_v30  ;;  %v1995_v48 = vld [vmem:[#allocation8 + $0x44] sm:$0xf0]  ;;  %v1504_v50 = vld [vmem:[#allocation8 + $0xc0] sm:$0xf]  ;;  %v1517_v52 = vor.u32 %v2012_v44, %v1514_v45  ;;  %v1994_v53 = vld [vmem:[#allocation8 + $0x44] sm:$0xf] }
  0x2a   :  { %v2011_v51 = vld [vmem:[#allocation8 + $0xc4] sm:$0xf0]  ;;  %v1442_v54 = vld [vmem:[#allocation8 + $0x48] sm:$0xf0]  ;;  %v1441_v55 = vor.u32 %v1995_v48, %v1440_v47  ;;  %v2010_v56 = vld [vmem:[#allocation8 + $0xc4] sm:$0xf] }
  0x2b   :  { %383 = vmatpush.bf16.msra.mxu2 %v1449_v42  ;;  %v1506_v57 = vld [vmem:[#allocation8 + $0xc8] sm:$0xf0]  ;;  %v1505_v58 = vor.u32 %v2011_v51, %v1504_v50  ;;  %v1432_v59 = vld [vmem:[#allocation8 + $0x30] sm:$0xf]  ;;  %v1993_v60 = vld [vmem:[#allocation8 + $0x34] sm:$0xf0]  ;;  %v1445_v61 = vor.u32 %v1994_v53, %v1442_v54 }
  0x2c   :  { %408 = vmatpush.bf16.msrb.mxu0 %v1461_v34  ;;  %v1496_v62 = vld [vmem:[#allocation8 + $0xb0] sm:$0xf]  ;;  %v2009_v63 = vld [vmem:[#allocation8 + $0xb4] sm:$0xf0]  ;;  %v1509_v0 = vor.u32 %v2010_v56, %v1506_v57  ;;  %v1992_v1 = vld [vmem:[#allocation8 + $0x34] sm:$0xf]  ;;  %v1433_v3 = vor.u32 %v1993_v60, %v1432_v59 }
  0x2d   :  { %421 = vmatpush.bf16.msrb.mxu1 %v1525_v38  ;;  %396 = vmatpush.bf16.msra.mxu3 %v1513_v46  ;;  %v1434_v2 = vld [vmem:[#allocation8 + $0x38] sm:$0xf0]  ;;  %v2008_v4 = vld [vmem:[#allocation8 + $0xb4] sm:$0xf]  ;;  %v1497_v6 = vor.u32 %v2009_v63, %v1496_v62  ;;  %v1424_v7 = vld [vmem:[#allocation8 + $0x20] sm:$0xf] }
  0x2e   :  { %v1498_v5 = vld [vmem:[#allocation8 + $0xb8] sm:$0xf0]  ;;  %v1991_v8 = vld [vmem:[#allocation8 + $0x24] sm:$0xf0]  ;;  %v1437_v9 = vor.u32 %v1992_v1, %v1434_v2  ;;  %v1488_v10 = vld [vmem:[#allocation8 + $0xa0] sm:$0xf] }
  0x2f   :  { %384 = vmatpush.bf16.msra.mxu2 %v1441_v55  ;;  %v2007_v11 = vld [vmem:[#allocation8 + $0xa4] sm:$0xf0]  ;;  %v1501_v12 = vor.u32 %v2008_v4, %v1498_v5  ;;  %v1990_v13 = vld [vmem:[#allocation8 + $0x24] sm:$0xf]  ;;  %v1426_v14 = vld [vmem:[#allocation8 + $0x28] sm:$0xf0]  ;;  %v1425_v15 = vor.u32 %v1991_v8, %v1424_v7 }
  0x30   :  { %409 = vmatpush.bf16.msrb.mxu0 %v1453_v49  ;;  %v2006_v16 = vld [vmem:[#allocation8 + $0xa4] sm:$0xf]  ;;  %v1490_v17 = vld [vmem:[#allocation8 + $0xa8] sm:$0xf0]  ;;  %v1489_v18 = vor.u32 %v2007_v11, %v1488_v10  ;;  %v1429_v19 = vor.u32 %v1990_v13, %v1426_v14  ;;  %v1416_v21 = vld [vmem:[#allocation8 + $0x10] sm:$0xf] }
  0x31   :  { %422 = vmatpush.bf16.msrb.mxu1 %v1517_v52  ;;  %397 = vmatpush.bf16.msra.mxu3 %v1505_v58  ;;  %v1493_v20 = vor.u32 %v2006_v16, %v1490_v17  ;;  %v1989_v22 = vld [vmem:[#allocation8 + $0x14] sm:$0xf0]  ;;  %v1480_v23 = vld [vmem:[#allocation8 + $0x90] sm:$0xf]  ;;  %v1988_v26 = vld [vmem:[#allocation8 + $0x14] sm:$0xf] }
  0x32   :  { %v1417_v24 = vor.u32 %v1989_v22, %v1416_v21  ;;  %v2005_v25 = vld [vmem:[#allocation8 + $0x94] sm:$0xf0]  ;;  %v1418_v27 = vld [vmem:[#allocation8 + $0x18] sm:$0xf0]  ;;  %v2004_v30 = vld [vmem:[#allocation8 + $0x94] sm:$0xf] }
  0x33   :  { %385 = vmatpush.bf16.msra.mxu2 %v1433_v3  ;;  %v1481_v28 = vor.u32 %v2005_v25, %v1480_v23  ;;  %v1421_v29 = vor.u32 %v1988_v26, %v1418_v27  ;;  %v1482_v31 = vld [vmem:[#allocation8 + $0x98] sm:$0xf0]  ;;  %v1408_v33 = vld [vmem:[#allocation8] sm:$0xf]  ;;  %v1987_v34 = vld [vmem:[#allocation8 + $0x4] sm:$0xf0] }
  0x34   :  { %410 = vmatpush.bf16.msrb.mxu0 %v1445_v61  ;;  %v1485_v32 = vor.u32 %v2004_v30, %v1482_v31  ;;  %v1472_v35 = vld [vmem:[#allocation8 + $0x80] sm:$0xf]  ;;  %v1409_v36 = vor.u32 %v1987_v34, %v1408_v33  ;;  %v2003_v37 = vld [vmem:[#allocation8 + $0x84] sm:$0xf0]  ;;  %v1986_v38 = vld [vmem:[#allocation8 + $0x4] sm:$0xf] }
  0x35   :  { %423 = vmatpush.bf16.msrb.mxu1 %v1509_v0  ;;  %398 = vmatpush.bf16.msra.mxu3 %v1497_v6  ;;  %v1410_v39 = vld [vmem:[#allocation8 + $0x8] sm:$0xf0]  ;;  %v1473_v40 = vor.u32 %v2003_v37, %v1472_v35  ;;  %v2002_v42 = vld [vmem:[#allocation8 + $0x84] sm:$0xf]  ;;  %v1656_v45 = vld [vmem:[#allocation8 + $0x1f0] sm:$0xf] }
  0x36   :  { %v1413_v41 = vor.u32 %v1986_v38, %v1410_v39  ;;  %v1474_v43 = vld [vmem:[#allocation8 + $0x88] sm:$0xf0]  ;;  %v2049_v46 = vld [vmem:[#allocation8 + $0x1f4] sm:$0xf0]  ;;  %v2048_v47 = vld [vmem:[#allocation8 + $0x1f4] sm:$0xf] }
  0x37   :  { %386 = vmatpush.bf16.msra.mxu2 %v1425_v15  ;;  %v1477_v44 = vor.u32 %v2002_v42, %v1474_v43  ;;  %v1657_v48 = vor.u32 %v2049_v46, %v1656_v45  ;;  %v1658_v49 = vld [vmem:[#allocation8 + $0x1f8] sm:$0xf0]  ;;  %v1648_v50 = vld [vmem:[#allocation8 + $0x1e0] sm:$0xf]  ;;  %v2047_v51 = vld [vmem:[#allocation8 + $0x1e4] sm:$0xf0] }
  0x38   :  { %411 = vmatpush.bf16.msrb.mxu0 %v1437_v9  ;;  %v1661_v52 = vor.u32 %v2048_v47, %v1658_v49  ;;  %v2046_v53 = vld [vmem:[#allocation8 + $0x1e4] sm:$0xf]  ;;  %v1650_v54 = vld [vmem:[#allocation8 + $0x1e8] sm:$0xf0]  ;;  %v1592_v55 = vld [vmem:[#allocation8 + $0x170] sm:$0xf]  ;;  %v1649_v56 = vor.u32 %v2047_v51, %v1648_v50 }
  0x39   :  { %424 = vmatpush.bf16.msrb.mxu1 %v1501_v12  ;;  %399 = vmatpush.bf16.msra.mxu3 %v1489_v18  ;;  %v2033_v57 = vld [vmem:[#allocation8 + $0x174] sm:$0xf0]  ;;  %v2032_v58 = vld [vmem:[#allocation8 + $0x174] sm:$0xf]  ;;  %v1594_v59 = vld [vmem:[#allocation8 + $0x178] sm:$0xf0]  ;;  %v1653_v60 = vor.u32 %v2046_v53, %v1650_v54 }
  0x3a   :  { %v1593_v61 = vor.u32 %v2033_v57, %v1592_v55  ;;  %v1597_v62 = vor.u32 %v2032_v58, %v1594_v59  ;;  %v1640_v63 = vld [vmem:[#allocation8 + $0x1d0] sm:$0xf]  ;;  %v2045_v0 = vld [vmem:[#allocation8 + $0x1d4] sm:$0xf0]  ;;  %v2044_v1 = vld [vmem:[#allocation8 + $0x1d4] sm:$0xf] }
  0x3b   :  { %387 = vmatpush.bf16.msra.mxu2 %v1417_v24  ;;  %v1642_v2 = vld [vmem:[#allocation8 + $0x1d8] sm:$0xf0]  ;;  %v1584_v3 = vld [vmem:[#allocation8 + $0x160] sm:$0xf]  ;;  %v2031_v4 = vld [vmem:[#allocation8 + $0x164] sm:$0xf0]  ;;  %v1641_v8 = vor.u32 %v2045_v0, %v1640_v63 }
  0x3c   :  { %412 = vmatpush.bf16.msrb.mxu0 %v1429_v19  ;;  %v1585_v5 = vor.u32 %v2031_v4, %v1584_v3  ;;  %v2030_v6 = vld [vmem:[#allocation8 + $0x164] sm:$0xf]  ;;  %v1586_v7 = vld [vmem:[#allocation8 + $0x168] sm:$0xf0]  ;;  %v1632_v10 = vld [vmem:[#allocation8 + $0x1c0] sm:$0xf]  ;;  %v1645_v12 = vor.u32 %v2044_v1, %v1642_v2 }
  0x3d   :  { %425 = vmatpush.bf16.msrb.mxu1 %v1493_v20  ;;  %400 = vmatpush.bf16.msra.mxu3 %v1481_v28  ;;  %v1589_v9 = vor.u32 %v2030_v6, %v1586_v7  ;;  %v2043_v11 = vld [vmem:[#allocation8 + $0x1c4] sm:$0xf0]  ;;  %v1576_v13 = vld [vmem:[#allocation8 + $0x150] sm:$0xf]  ;;  %v2029_v14 = vld [vmem:[#allocation8 + $0x154] sm:$0xf0] }
  0x3e   :  { %v2028_v15 = vld [vmem:[#allocation8 + $0x154] sm:$0xf]  ;;  %v2042_v16 = vld [vmem:[#allocation8 + $0x1c4] sm:$0xf]  ;;  %v1634_v17 = vld [vmem:[#allocation8 + $0x1c8] sm:$0xf0]  ;;  %v1577_v19 = vor.u32 %v2029_v14, %v1576_v13  ;;  %v1633_v22 = vor.u32 %v2043_v11, %v1632_v10 }
  0x3f   :  { %388 = vmatpush.bf16.msra.mxu2 %v1409_v36  ;;  %v1578_v18 = vld [vmem:[#allocation8 + $0x158] sm:$0xf0]  ;;  %v1568_v21 = vld [vmem:[#allocation8 + $0x140] sm:$0xf]  ;;  %v2027_v23 = vld [vmem:[#allocation8 + $0x144] sm:$0xf0]  ;;  %v1637_v26 = vor.u32 %v2042_v16, %v1634_v17 }
  0x40   :  { %413 = vmatpush.bf16.msrb.mxu0 %v1421_v29  ;;  %v1581_v20 = vor.u32 %v2028_v15, %v1578_v18  ;;  %v2026_v24 = vld [vmem:[#allocation8 + $0x144] sm:$0xf]  ;;  %v1570_v25 = vld [vmem:[#allocation8 + $0x148] sm:$0xf0]  ;;  %v1624_v27 = vld [vmem:[#allocation8 + $0x1b0] sm:$0xf]  ;;  %v1569_v31 = vor.u32 %v2027_v23, %v1568_v21 }
  0x41   :  { %426 = vmatpush.bf16.msrb.mxu1 %v1485_v32  ;;  %401 = vmatpush.bf16.msra.mxu3 %v1473_v40  ;;  %v2041_v28 = vld [vmem:[#allocation8 + $0x1b4] sm:$0xf0]  ;;  %v2040_v29 = vld [vmem:[#allocation8 + $0x1b4] sm:$0xf]  ;;  %v1626_v30 = vld [vmem:[#allocation8 + $0x1b8] sm:$0xf0]  ;;  %v1573_v32 = vor.u32 %v2026_v24, %v1570_v25 }
  0x42   :  { %v1625_v33 = vor.u32 %v2041_v28, %v1624_v27  ;;  %v1629_v34 = vor.u32 %v2040_v29, %v1626_v30  ;;  %v1616_v35 = vld [vmem:[#allocation8 + $0x1a0] sm:$0xf]  ;;  %v2039_v36 = vld [vmem:[#allocation8 + $0x1a4] sm:$0xf0]  ;;  %v123_v37 = vld [vmem:[#allocation7] sm:$0x3] }
  0x43   :  { %637 = vmatpush.bf16.msrb.mxu2 %v1593_v61  ;;  %v2038_v38 = vld [vmem:[#allocation8 + $0x1a4] sm:$0xf]  ;;  %v1618_v39 = vld [vmem:[#allocation8 + $0x1a8] sm:$0xf0]  ;;  %v1617_v40 = vor.u32 %v2039_v36, %v1616_v35  ;;  %v126_v43 = vperm.slane %v123_v37, 1  ;;  %s1373_s11 = sshll.u32 %s2334_s10, 4  ;;  %s1374_s11 = int_to_ptr.vmem [resolvable:$true] %s1373_s11 }
  0x44   :  { %414 = vmatpush.bf16.msrb.mxu0 %v1413_v41  ;;  %v125_v41 = vperm.slane %v123_v37, 0  ;;  %v1621_v42 = vor.u32 %v2038_v38, %v1618_v39  ;;  %v1560_v54 = vld [vmem:[#allocation8 + $0x130] sm:$0xf]  ;;  %v2025_v55 = vld [vmem:[#allocation8 + $0x134] sm:$0xf0]  ;;  %s1375_s14 = sshll.u32 %s2428_s7, 4  ;;  %s1376_s14 = int_to_ptr.hbm [resolvable:$true] %s1375_s14 }
  0x45   :  { %427 = vmatpush.bf16.msrb.mxu1 %v1477_v44  ;;  %650 = vmatpush.bf16.msrb.mxu3 %v1657_v48  ;;  %v1561_v57 = vor.u32 %v2025_v55, %v1560_v54  ;;  %v1562_v58 = vld [vmem:[#allocation8 + $0x138] sm:$0xf0]  ;;  %v2037_v61 = vld [vmem:[#allocation8 + $0x194] sm:$0xf0]  ;;  %v1552_v2 = vld [vmem:[#allocation8 + $0x120] sm:$0xf] }
  0x46   :  { %v1610_v0 = vld [vmem:[#allocation8 + $0x198] sm:$0xf0]  ;;  %v2023_v3 = vld [vmem:[#allocation8 + $0x124] sm:$0xf0]  ;;  %v2022_v4 = vld [vmem:[#allocation8 + $0x124] sm:$0xf] }
  0x47   :  { %638 = vmatpush.bf16.msrb.mxu2 %v1585_v5  ;;  %v1553_v5 = vor.u32 %v2023_v3, %v1552_v2  ;;  %v1554_v6 = vld [vmem:[#allocation8 + $0x128] sm:$0xf0]  ;;  %v2034_v10 = vld [vmem:[#allocation8 + $0x184] sm:$0xf]  ;;  %v1544_v14 = vld [vmem:[#allocation8 + $0x110] sm:$0xf] }
  0x48   :  { %663 = vmatpush.bf16.msra.mxu0 %v1597_v62  ;;  %v2036_v62 = vld [vmem:[#allocation8 + $0x194] sm:$0xf]  ;;  %v1557_v7 = vor.u32 %v2022_v4, %v1554_v6  ;;  %v2021_v15 = vld [vmem:[#allocation8 + $0x114] sm:$0xf0]  ;;  %v1546_v18 = vld [vmem:[#allocation8 + $0x118] sm:$0xf0] }
  0x49   :  { %676 = vmatpush.bf16.msra.mxu1 %v1661_v52  ;;  %651 = vmatpush.bf16.msrb.mxu3 %v1649_v56  ;;  %v2024_v56 = vld [vmem:[#allocation8 + $0x134] sm:$0xf]  ;;  %v1613_v1 = vor.u32 %v2036_v62, %v1610_v0  ;;  %v1545_v16 = vor.u32 %v2021_v15, %v1544_v14  ;;  %v2019_v21 = vld [vmem:[#allocation8 + $0x104] sm:$0xf0]  ;;  %v1538_v24 = vld [vmem:[#allocation8 + $0x108] sm:$0xf0] }
  0x4a   :  { %v1565_v59 = vor.u32 %v2024_v56, %v1562_v58  ;;  %v2020_v17 = vld [vmem:[#allocation8 + $0x114] sm:$0xf]  ;;  %v2081_v27 = vld [vmem:[#allocation8 + $0x2f4] sm:$0xf0]  ;;  %v1786_v30 = vld [vmem:[#allocation8 + $0x2f8] sm:$0xf0] }
  0x4b   :  { %639 = vmatpush.bf16.msrb.mxu2 %v1577_v19  ;;  %v1549_v19 = vor.u32 %v2020_v17, %v1546_v18  ;;  %v2080_v28 = vld [vmem:[#allocation8 + $0x2f4] sm:$0xf]  ;;  %v1778_v35 = vld [vmem:[#allocation8 + $0x2e8] sm:$0xf0]  ;;  %v1720_v36 = vld [vmem:[#allocation8 + $0x270] sm:$0xf] }
  0x4c   :  { %664 = vmatpush.bf16.msra.mxu0 %v1589_v9  ;;  %v2035_v9 = vld [vmem:[#allocation8 + $0x184] sm:$0xf0]  ;;  %v2065_v38 = vld [vmem:[#allocation8 + $0x274] sm:$0xf0]  ;;  %v2064_v39 = vld [vmem:[#allocation8 + $0x274] sm:$0xf] }
  0x4d   :  { %677 = vmatpush.bf16.msra.mxu1 %v1653_v60  ;;  %652 = vmatpush.bf16.msrb.mxu3 %v1641_v8  ;;  %v1608_v60 = vld [vmem:[#allocation8 + $0x190] sm:$0xf]  ;;  %v1600_v8 = vld [vmem:[#allocation8 + $0x180] sm:$0xf]  ;;  %v1714_v54 = vld [vmem:[#allocation8 + $0x268] sm:$0xf0] }
  0x4e   :  { %v1609_v63 = vor.u32 %v2037_v61, %v1608_v60  ;;  %v1601_v11 = vor.u32 %v2035_v9, %v1600_v8  ;;  %v1760_v58 = vld [vmem:[#allocation8 + $0x2c0] sm:$0xf]  ;;  %v2074_v60 = vld [vmem:[#allocation8 + $0x2c4] sm:$0xf]  ;;  %v1762_v61 = vld [vmem:[#allocation8 + $0x2c8] sm:$0xf0] }
  0x4f   :  { %640 = vmatpush.bf16.msrb.mxu2 %v1569_v31  ;;  %v1776_v31 = vld [vmem:[#allocation8 + $0x2e0] sm:$0xf]  ;;  %v1765_v0 = vor.u32 %v2074_v60, %v1762_v61  ;;  %v1682_v61 = vld [vmem:[#allocation8 + $0x228] sm:$0xf0] }
  0x50   :  { %665 = vmatpush.bf16.msra.mxu0 %v1581_v20  ;;  %v1536_v20 = vld [vmem:[#allocation8 + $0x100] sm:$0xf] }
  0x51   :  { %678 = vmatpush.bf16.msra.mxu1 %v1645_v12  ;;  %653 = vmatpush.bf16.msrb.mxu3 %v1633_v22  ;;  %v1602_v12 = vld [vmem:[#allocation8 + $0x188] sm:$0xf0]  ;;  %v2018_v22 = vld [vmem:[#allocation8 + $0x104] sm:$0xf]  ;;  %v1537_v23 = vor.u32 %v2019_v21, %v1536_v20  ;;  %v215_v62 = vld [vmem:[#allocation10] sm:$0x3] }
  0x52   :  { %v1605_v13 = vor.u32 %v2034_v10, %v1602_v12  ;;  %v1541_v25 = vor.u32 %v2018_v22, %v1538_v24  ;;  %v217_v6 = vperm.slane %v215_v62, 0  ;;  %v2061_v20 = vld [vmem:[#allocation8 + $0x254] sm:$0xf0]  ;;  %v2060_v21 = vld [vmem:[#allocation8 + $0x254] sm:$0xf] }
  0x53   :  { %641 = vmatpush.bf16.msrb.mxu2 %v1561_v57 }
  0x54   :  { %666 = vmatpush.bf16.msra.mxu0 %v1573_v32  ;;  %v2079_v32 = vld [vmem:[#allocation8 + $0x2e4] sm:$0xf0] }
  0x55   :  { %679 = vmatpush.bf16.msra.mxu1 %v1637_v26  ;;  %654 = vmatpush.bf16.msrb.mxu3 %v1625_v33  ;;  %v1784_v26 = vld [vmem:[#allocation8 + $0x2f0] sm:$0xf]  ;;  %v1789_v33 = vor.u32 %v2080_v28, %v1786_v30  ;;  %v1777_v37 = vor.u32 %v2079_v32, %v1776_v31  ;;  %v1696_v30 = vld [vmem:[#allocation8 + $0x240] sm:$0xf]  ;;  %v2059_v31 = vld [vmem:[#allocation8 + $0x244] sm:$0xf0] }
  0x56   :  { %v1785_v29 = vor.u32 %v2081_v27, %v1784_v26  ;;  %v2073_v26 = vld [vmem:[#allocation8 + $0x2b4] sm:$0xf0]  ;;  %v2072_v27 = vld [vmem:[#allocation8 + $0x2b4] sm:$0xf] }
  0x57   :  { %642 = vmatpush.bf16.msrb.mxu2 %v1553_v5 }
  0x58   :  { %667 = vmatpush.bf16.msra.mxu0 %v1565_v59  ;;  %v2075_v59 = vld [vmem:[#allocation8 + $0x2c4] sm:$0xf0] }
  0x59   :  { %680 = vmatpush.bf16.msra.mxu1 %v1629_v34  ;;  %655 = vmatpush.bf16.msrb.mxu3 %v1617_v40  ;;  %v2078_v34 = vld [vmem:[#allocation8 + $0x2e4] sm:$0xf]  ;;  %v1722_v40 = vld [vmem:[#allocation8 + $0x278] sm:$0xf0] }
  0x5b   :  { %643 = vmatpush.bf16.msrb.mxu2 %v1545_v16 }
  0x5c   :  { %668 = vmatpush.bf16.msra.mxu0 %v1557_v7 }
  0x5d   :  { %681 = vmatpush.bf16.msra.mxu1 %v1621_v42  ;;  %656 = vmatpush.bf16.msrb.mxu3 %v1609_v63  ;;  %v1721_v42 = vor.u32 %v2065_v38, %v1720_v36  ;;  %v1761_v63 = vor.u32 %v2075_v59, %v1760_v58  ;;  %v2071_v38 = vld [vmem:[#allocation8 + $0x2a4] sm:$0xf0]  ;;  %v2054_v59 = vld [vmem:[#allocation8 + $0x224] sm:$0xf] }
  0x5e   :  { %v2055_v58 = vld [vmem:[#allocation8 + $0x224] sm:$0xf0] }
  0x5f   :  { %644 = vmatpush.bf16.msrb.mxu2 %v1537_v23  ;;  %v1706_v23 = vld [vmem:[#allocation8 + $0x258] sm:$0xf0] }
  0x60   :  { %669 = vmatpush.bf16.msra.mxu0 %v1549_v19  ;;  %v1704_v19 = vld [vmem:[#allocation8 + $0x250] sm:$0xf]  ;;  %v1709_v24 = vor.u32 %v2060_v21, %v1706_v23  ;;  %v1914_v21 = vld [vmem:[#allocation8 + $0x3f8] sm:$0xf0]  ;;  %v2111_v23 = vld [vmem:[#allocation8 + $0x3e4] sm:$0xf0] }
  0x61   :  { %682 = vmatpush.bf16.msra.mxu1 %v1613_v1  ;;  %657 = vmatpush.bf16.msrb.mxu3 %v1601_v11  ;;  %v218_v1 = vperm.slane %v215_v62, 1  ;;  %v1705_v22 = vor.u32 %v2061_v20, %v1704_v19  ;;  %v1685_v62 = vor.u32 %v2054_v59, %v1682_v61  ;;  %v2112_v19 = vld [vmem:[#allocation8 + $0x3f4] sm:$0xf] }
  0x64   :  { %670 = vmatpush.bf16.msra.mxu0 %v1541_v25  ;;  %v1752_v25 = vld [vmem:[#allocation8 + $0x2b0] sm:$0xf] }
  0x65   :  { %683 = vmatpush.bf16.msra.mxu1 %v1605_v13  ;;  %v1753_v28 = vor.u32 %v2073_v26, %v1752_v25  ;;  %v2110_v25 = vld [vmem:[#allocation8 + $0x3e4] sm:$0xf]  ;;  %v1906_v26 = vld [vmem:[#allocation8 + $0x3e8] sm:$0xf0] }
  0xa4   :  { %v162_v44 = vpop.f32.mrf.mxu0 }
  0xa5   :  { %v163_v45 = vadd.f32 %v162_v44, %v125_v41  ;;  %v175_v46 = vpop.f32.mrf.mxu1  ;;  %v1781_v41 = vor.u32 %v2078_v34, %v1778_v35  ;;  %v1768_v44 = vld [vmem:[#allocation8 + $0x2d0] sm:$0xf]  ;;  %v2058_v34 = vld [vmem:[#allocation8 + $0x244] sm:$0xf]  ;;  %v1698_v35 = vld [vmem:[#allocation8 + $0x248] sm:$0xf0] }
  0xa6   :  { %v176_v47 = vadd.f32 %v175_v46, %v126_v43  ;;  %v1725_v43 = vor.u32 %v2064_v39, %v1722_v40  ;;  %v2076_v46 = vld [vmem:[#allocation8 + $0x2d4] sm:$0xf]  ;;  %v1701_v36 = vor.u32 %v2058_v34, %v1698_v35  ;;  %v2070_v39 = vld [vmem:[#allocation8 + $0x2a4] sm:$0xf]  ;;  %v1896_v35 = vld [vmem:[#allocation8 + $0x3d0] sm:$0xf] }
  0xa7   :  { %v2395_v48 = vmax.f32 %v163_v45, 0.0  ;;  %v2077_v45 = vld [vmem:[#allocation8 + $0x2d4] sm:$0xf0] }
  0xa8   :  { %v2397_v49 = vmax.f32 %v176_v47, 0.0  ;;  %v1770_v47 = vld [vmem:[#allocation8 + $0x2d8] sm:$0xf0]  ;;  %v1769_v55 = vor.u32 %v2077_v45, %v1768_v44  ;;  %v2057_v44 = vld [vmem:[#allocation8 + $0x234] sm:$0xf0] }
  0xa9   :  { %v181_v50 = vpack.c.bf16 %v2395_v48, %v2395_v48  ;;  %v1773_v57 = vor.u32 %v2076_v46, %v1770_v47  ;;  %v2056_v46 = vld [vmem:[#allocation8 + $0x234] sm:$0xf]  ;;  %v1690_v47 = vld [vmem:[#allocation8 + $0x238] sm:$0xf0] }
  0xaa   :  { %v182_v51 = vpack.c.bf16 %v2397_v49, %v2397_v49 }
  0xab   :  { %389 = vmatmul.bf16.vlgmr.msra.gmra.mxu2 %v181_v50  ;;  %415 = vmatmul.bf16.vlgmr.msrb.gmra.mxu0 %v181_v50  ;;  %v1712_v50 = vld [vmem:[#allocation8 + $0x260] sm:$0xf] }
  0xac   :  { %402 = vmatmul.bf16.vlgmr.msra.gmra.mxu3 %v182_v51  ;;  %428 = vmatmul.bf16.vlgmr.msrb.gmra.mxu1 %v182_v51  ;;  %v164_v52 = vpop.f32.mrf.mxu0  ;;  %v2063_v51 = vld [vmem:[#allocation8 + $0x264] sm:$0xf0] }
  0xad   :  { %v177_v53 = vpop.f32.mrf.mxu1  ;;  %908 = vmatpush.bf16.msra.mxu3 %v1785_v29  ;;  %934 = vmatpush.bf16.msrb.mxu1 %v1789_v33  ;;  %v1713_v52 = vor.u32 %v2063_v51, %v1712_v50  ;;  %v1754_v29 = vld [vmem:[#allocation8 + $0x2b8] sm:$0xf0]  ;;  %v1697_v33 = vor.u32 %v2059_v31, %v1696_v30  ;;  %v1693_v50 = vor.u32 %v2056_v46, %v1690_v47  ;;  %v1736_v51 = vld [vmem:[#allocation8 + $0x290] sm:$0xf]  ;;  %v2096_v30 = vld [vmem:[#allocation8 + $0x374] sm:$0xf] }
  0xae   :  { %895 = vmatpush.bf16.msra.mxu2 %v1721_v42  ;;  %921 = vmatpush.bf16.msrb.mxu0 %v1725_v43  ;;  %v2062_v53 = vld [vmem:[#allocation8 + $0x264] sm:$0xf]  ;;  %v1757_v32 = vor.u32 %v2072_v27, %v1754_v29  ;;  %v1688_v43 = vld [vmem:[#allocation8 + $0x230] sm:$0xf]  ;;  %v2097_v29 = vld [vmem:[#allocation8 + $0x374] sm:$0xf0] }
  0xaf   :  { %v1717_v56 = vor.u32 %v2062_v53, %v1714_v54  ;;  %v1689_v45 = vor.u32 %v2057_v44, %v1688_v43  ;;  %v2068_v53 = vld [vmem:[#allocation8 + $0x294] sm:$0xf]  ;;  %v1848_v27 = vld [vmem:[#allocation8 + $0x370] sm:$0xf]  ;;  %v1850_v31 = vld [vmem:[#allocation8 + $0x378] sm:$0xf0] }
  0xb0   :  { %v1853_v34 = vor.u32 %v2096_v30, %v1850_v31  ;;  %v1842_v43 = vld [vmem:[#allocation8 + $0x368] sm:$0xf0]  ;;  %v471_v44 = vld [vmem:[#allocation10 + $0x2] sm:$0x3]  ;;  %v2102_v31 = vld [vmem:[#allocation8 + $0x3a4] sm:$0xf] }
  0xb1   :  { %909 = vmatpush.bf16.msra.mxu3 %v1777_v37  ;;  %935 = vmatpush.bf16.msrb.mxu1 %v1781_v41  ;;  %v1744_v37 = vld [vmem:[#allocation8 + $0x2a0] sm:$0xf]  ;;  %v1746_v41 = vld [vmem:[#allocation8 + $0x2a8] sm:$0xf0] }
  0xb2   :  { %896 = vmatpush.bf16.msra.mxu2 %v1713_v52  ;;  %922 = vmatpush.bf16.msrb.mxu0 %v1717_v56  ;;  %v1745_v40 = vor.u32 %v2071_v38, %v1744_v37  ;;  %v1749_v42 = vor.u32 %v2070_v39, %v1746_v41  ;;  %v2069_v52 = vld [vmem:[#allocation8 + $0x294] sm:$0xf0]  ;;  %v2108_v37 = vld [vmem:[#allocation8 + $0x3d4] sm:$0xf]  ;;  %v1898_v38 = vld [vmem:[#allocation8 + $0x3d8] sm:$0xf0] }
  0xb3   :  { %v1737_v54 = vor.u32 %v2069_v52, %v1736_v51  ;;  %v1840_v39 = vld [vmem:[#allocation8 + $0x360] sm:$0xf]  ;;  %v1901_v51 = vor.u32 %v2108_v37, %v1898_v38  ;;  %v1832_v52 = vld [vmem:[#allocation8 + $0x350] sm:$0xf]  ;;  %v1818_v38 = vld [vmem:[#allocation8 + $0x338] sm:$0xf0] }
  0xb4   :  { %v1888_v47 = vld [vmem:[#allocation8 + $0x3c0] sm:$0xf] }
  0xb5   :  { %910 = vmatpush.bf16.msra.mxu3 %v1769_v55  ;;  %936 = vmatpush.bf16.msrb.mxu1 %v1773_v57  ;;  %v1738_v55 = vld [vmem:[#allocation8 + $0x298] sm:$0xf0]  ;;  %v1680_v57 = vld [vmem:[#allocation8 + $0x220] sm:$0xf] }
  0xb6   :  { %897 = vmatpush.bf16.msra.mxu2 %v1705_v22  ;;  %923 = vmatpush.bf16.msrb.mxu0 %v1709_v24  ;;  %v1741_v56 = vor.u32 %v2068_v53, %v1738_v55  ;;  %v1681_v60 = vor.u32 %v2055_v58, %v1680_v57  ;;  %v1904_v22 = vld [vmem:[#allocation8 + $0x3e0] sm:$0xf]  ;;  %v1917_v24 = vor.u32 %v2112_v19, %v1914_v21  ;;  %v2093_v53 = vld [vmem:[#allocation8 + $0x354] sm:$0xf0]  ;;  %v1890_v57 = vld [vmem:[#allocation8 + $0x3c8] sm:$0xf0] }
  0xb7   :  { %v1834_v58 = vld [vmem:[#allocation8 + $0x358] sm:$0xf0]  ;;  %v1833_v59 = vor.u32 %v2093_v53, %v1832_v52  ;;  %v2104_v19 = vld [vmem:[#allocation8 + $0x3b4] sm:$0xf]  ;;  %v1810_v52 = vld [vmem:[#allocation8 + $0x328] sm:$0xf0] }
  0xb8   :  { %v1882_v21 = vld [vmem:[#allocation8 + $0x3b8] sm:$0xf0] }
  0xb9   :  { %911 = vmatpush.bf16.msra.mxu3 %v1761_v63  ;;  %937 = vmatpush.bf16.msrb.mxu1 %v1765_v0  ;;  %v1728_v63 = vld [vmem:[#allocation8 + $0x280] sm:$0xf]  ;;  %v2067_v0 = vld [vmem:[#allocation8 + $0x284] sm:$0xf0] }
  0xba   :  { %898 = vmatpush.bf16.msra.mxu2 %v1697_v33  ;;  %924 = vmatpush.bf16.msrb.mxu0 %v1701_v36  ;;  %v1849_v33 = vor.u32 %v2097_v29, %v1848_v27  ;;  %v2109_v36 = vld [vmem:[#allocation8 + $0x3d4] sm:$0xf0]  ;;  %v1872_v27 = vld [vmem:[#allocation8 + $0x3a0] sm:$0xf] }
  0xbd   :  { %912 = vmatpush.bf16.msra.mxu3 %v1753_v28  ;;  %938 = vmatpush.bf16.msrb.mxu1 %v1757_v32  ;;  %v1905_v28 = vor.u32 %v2111_v23, %v1904_v22  ;;  %v1909_v32 = vor.u32 %v2110_v25, %v1906_v26  ;;  %v1885_v22 = vor.u32 %v2104_v19, %v1882_v21  ;;  %v1824_v23 = vld [vmem:[#allocation8 + $0x340] sm:$0xf]  ;;  %v2090_v25 = vld [vmem:[#allocation8 + $0x344] sm:$0xf]  ;;  %v1826_v26 = vld [vmem:[#allocation8 + $0x348] sm:$0xf0] }
  0xbe   :  { %899 = vmatpush.bf16.msra.mxu2 %v1689_v45  ;;  %925 = vmatpush.bf16.msrb.mxu0 %v1693_v50  ;;  %v1897_v45 = vor.u32 %v2109_v36, %v1896_v35  ;;  %v2107_v50 = vld [vmem:[#allocation8 + $0x3c4] sm:$0xf0]  ;;  %v1829_v29 = vor.u32 %v2090_v25, %v1826_v26  ;;  %v2089_v35 = vld [vmem:[#allocation8 + $0x334] sm:$0xf0]  ;;  %v2088_v36 = vld [vmem:[#allocation8 + $0x334] sm:$0xf] }
  0xbf   :  { %v1889_v61 = vor.u32 %v2107_v50, %v1888_v47  ;;  %v2087_v47 = vld [vmem:[#allocation8 + $0x324] sm:$0xf0]  ;;  %v2086_v50 = vld [vmem:[#allocation8 + $0x324] sm:$0xf] }
  0xc0   :  { %v1813_v53 = vor.u32 %v2086_v50, %v1810_v52 }
  0xc1   :  { %913 = vmatpush.bf16.msra.mxu3 %v1745_v40  ;;  %939 = vmatpush.bf16.msrb.mxu1 %v1749_v42  ;;  %v2095_v40 = vld [vmem:[#allocation8 + $0x364] sm:$0xf0]  ;;  %v2094_v42 = vld [vmem:[#allocation8 + $0x364] sm:$0xf] }
  0xc2   :  { %900 = vmatpush.bf16.msra.mxu2 %v1681_v60  ;;  %926 = vmatpush.bf16.msrb.mxu0 %v1685_v62  ;;  %v1841_v41 = vor.u32 %v2095_v40, %v1840_v39  ;;  %v1845_v46 = vor.u32 %v2094_v42, %v1842_v43  ;;  %v474_v62 = vperm.slane %v471_v44, 1  ;;  %v1821_v39 = vor.u32 %v2088_v36, %v1818_v38  ;;  %v1864_v40 = vld [vmem:[#allocation8 + $0x390] sm:$0xf]  ;;  %v2100_v43 = vld [vmem:[#allocation8 + $0x394] sm:$0xf]  ;;  %v2124_v36 = vld [vmem:[#allocation11 + $0x50] sm:$0xff] }
  0xc3   :  { %v2123_v38 = vld [vmem:[#allocation11 + $0x48] sm:$0xff] }
  0xc5   :  { %914 = vmatpush.bf16.msra.mxu3 %v1737_v54  ;;  %940 = vmatpush.bf16.msrb.mxu1 %v1741_v56  ;;  %v2092_v54 = vld [vmem:[#allocation8 + $0x354] sm:$0xf]  ;;  %v2106_v56 = vld [vmem:[#allocation8 + $0x3c4] sm:$0xf] }
  0xc6   :  { %v1837_v60 = vor.u32 %v2092_v54, %v1834_v58  ;;  %v1856_v54 = vld [vmem:[#allocation8 + $0x380] sm:$0xf]  ;;  %v1858_v58 = vld [vmem:[#allocation8 + $0x388] sm:$0xf0] }
 0x128   :  { %v416_v2 = vpop.f32.mrf.mxu0 }
 0x129   :  { %v417_v3 = vadd.f32 %v416_v2, %v218_v1  ;;  %v429_v4 = vpop.f32.mrf.mxu1  ;;  %v1729_v1 = vor.u32 %v2067_v0, %v1728_v63  ;;  %v2066_v2 = vld [vmem:[#allocation8 + $0x284] sm:$0xf]  ;;  %v1893_v63 = vor.u32 %v2106_v56, %v1890_v57 }
 0x12a   :  { %v2098_v56 = vld [vmem:[#allocation8 + $0x384] sm:$0xf] }
 0x12b   :  { %v430_v5 = vadd.f32 %v429_v4, %v417_v3  ;;  %v1730_v3 = vld [vmem:[#allocation8 + $0x288] sm:$0xf0]  ;;  %915 = vmatpush.bf16.msra.mxu3 %v1729_v1 }
 0x12c   :  { %v1733_v4 = vor.u32 %v2066_v2, %v1730_v3 }
 0x12d   :  { %v434_v7 = vmax.f32 %v430_v5, 0.0  ;;  %v1672_v5 = vld [vmem:[#allocation8 + $0x210] sm:$0xf] }
 0x12e   :  { %v390_v8 = vpop.f32.mrf.mxu2  ;;  %941 = vmatpush.bf16.msrb.mxu1 %v1733_v4 }
 0x12f   :  { %v436_v9 = vpack.c.bf16 %v434_v7, %v434_v7  ;;  %v391_v10 = vadd.f32 %v390_v8, %v217_v6  ;;  %v403_v11 = vpop.f32.mrf.mxu3  ;;  %v2053_v6 = vld [vmem:[#allocation8 + $0x214] sm:$0xf0]  ;;  %v2052_v7 = vld [vmem:[#allocation8 + $0x214] sm:$0xf] }
 0x130   :  { %v418_v12 = vpop.f32.mrf.mxu0  ;;  %v1673_v8 = vor.u32 %v2053_v6, %v1672_v5  ;;  %v473_v5 = vperm.slane %v471_v44, 0  ;;  %v1866_v44 = vld [vmem:[#allocation8 + $0x398] sm:$0xf0] }
 0x131   :  { %v404_v13 = vadd.f32 %v403_v11, %v391_v10  ;;  %v431_v14 = vpop.f32.mrf.mxu1  ;;  %658 = vmatmul.bf16.vlgmr.msrb.gmra.mxu3 %v436_v9  ;;  %684 = vmatmul.bf16.vlgmr.msra.gmra.mxu1 %v436_v9  ;;  %v1674_v9 = vld [vmem:[#allocation8 + $0x218] sm:$0xf0]  ;;  %v1664_v11 = vld [vmem:[#allocation8 + $0x200] sm:$0xf]  ;;  %v2051_v12 = vld [vmem:[#allocation8 + $0x204] sm:$0xf0] }
 0x132   :  { %v1677_v10 = vor.u32 %v2052_v7, %v1674_v9  ;;  %901 = vmatpush.bf16.msra.mxu2 %v1673_v8  ;;  %v1665_v14 = vor.u32 %v2051_v12, %v1664_v11  ;;  %1190 = vmatpush.bf16.msra.mxu1 %v1917_v24  ;;  %v2091_v24 = vld [vmem:[#allocation8 + $0x344] sm:$0xf0] }
 0x133   :  { %v433_v15 = vmax.f32 %v404_v13, 0.0  ;;  %v2050_v13 = vld [vmem:[#allocation8 + $0x204] sm:$0xf] }
 0x134   :  { %927 = vmatpush.bf16.msrb.mxu0 %v1677_v10 }
 0x135   :  { %v435_v16 = vpack.c.bf16 %v433_v15, %v433_v15  ;;  %v1666_v15 = vld [vmem:[#allocation8 + $0x208] sm:$0xf0] }
 0x136   :  { %v392_v17 = vpop.f32.mrf.mxu2  ;;  %902 = vmatpush.bf16.msra.mxu2 %v1665_v14  ;;  %1191 = vmatpush.bf16.msra.mxu1 %v1909_v32  ;;  %v1874_v32 = vld [vmem:[#allocation8 + $0x3a8] sm:$0xf0] }
 0x137   :  { %v405_v18 = vpop.f32.mrf.mxu3  ;;  %645 = vmatmul.bf16.vlgmr.msrb.gmra.mxu2 %v435_v16  ;;  %671 = vmatmul.bf16.vlgmr.msra.gmra.mxu0 %v435_v16  ;;  %v1669_v16 = vor.u32 %v2050_v13, %v1666_v15  ;;  %v1912_v17 = vld [vmem:[#allocation8 + $0x3f0] sm:$0xf] }
 0x138   :  { %v2113_v18 = vld [vmem:[#allocation8 + $0x3f4] sm:$0xf0] }
 0x139   :  { %928 = vmatpush.bf16.msrb.mxu0 %v1669_v16  ;;  %v1913_v20 = vor.u32 %v2113_v18, %v1912_v17  ;;  %v1880_v17 = vld [vmem:[#allocation8 + $0x3b0] sm:$0xf]  ;;  %v2105_v18 = vld [vmem:[#allocation8 + $0x3b4] sm:$0xf0] }
 0x13a   :  { %1151 = vmatpush.bf16.msrb.mxu2 %v1849_v33  ;;  %1192 = vmatpush.bf16.msra.mxu1 %v1901_v51  ;;  %v1877_v33 = vor.u32 %v2102_v31, %v1874_v32 }
 0x13b   :  { %1164 = vmatpush.bf16.msrb.mxu3 %v1913_v20  ;;  %v1881_v20 = vor.u32 %v2105_v18, %v1880_v17 }
 0x13d   :  { %1177 = vmatpush.bf16.msra.mxu0 %v1853_v34  ;;  %v1816_v34 = vld [vmem:[#allocation8 + $0x330] sm:$0xf] }
 0x13e   :  { %1152 = vmatpush.bf16.msrb.mxu2 %v1841_v41  ;;  %1193 = vmatpush.bf16.msra.mxu1 %v1893_v63  ;;  %v1817_v37 = vor.u32 %v2089_v35, %v1816_v34  ;;  %v2101_v41 = vld [vmem:[#allocation8 + $0x394] sm:$0xf0]  ;;  %v2084_v63 = vld [vmem:[#allocation8 + $0x314] sm:$0xf]  ;;  %v2125_v34 = vld [vmem:[#allocation11 + $0x58] sm:$0xff] }
 0x13f   :  { %1165 = vmatpush.bf16.msrb.mxu3 %v1905_v28  ;;  %v2103_v28 = vld [vmem:[#allocation8 + $0x3a4] sm:$0xf0]  ;;  %v1865_v42 = vor.u32 %v2101_v41, %v1864_v40  ;;  %v2115_v41 = vld [vmem:[#allocation11 + $0x8] sm:$0xff] }
 0x140   :  { %v1873_v30 = vor.u32 %v2103_v28, %v1872_v27  ;;  %v2118_v35 = vld [vmem:[#allocation11 + $0x20] sm:$0xff] }
 0x141   :  { %1178 = vmatpush.bf16.msra.mxu0 %v1845_v46  ;;  %v1808_v46 = vld [vmem:[#allocation8 + $0x320] sm:$0xf]  ;;  %v2122_v40 = vld [vmem:[#allocation11 + $0x40] sm:$0xff] }
 0x142   :  { %1153 = vmatpush.bf16.msrb.mxu2 %v1833_v59  ;;  %1194 = vmatpush.bf16.msra.mxu1 %v1885_v22  ;;  %v1809_v51 = vor.u32 %v2087_v47, %v1808_v46  ;;  %v1861_v59 = vor.u32 %v2098_v56, %v1858_v58 }
 0x143   :  { %1166 = vmatpush.bf16.msrb.mxu3 %v1897_v45  ;;  %v1869_v45 = vor.u32 %v2100_v43, %v1866_v44  ;;  %v985_v44 = vld [vmem:[#allocation10 + $0x6] sm:$0x3] }
 0x145   :  { %1179 = vmatpush.bf16.msra.mxu0 %v1837_v60  ;;  %v1800_v60 = vld [vmem:[#allocation8 + $0x310] sm:$0xf] }
 0x146   :  { %1195 = vmatpush.bf16.msra.mxu1 %v1877_v33  ;;  %v2119_v33 = vld [vmem:[#allocation11 + $0x28] sm:$0xff] }
 0x147   :  { %1167 = vmatpush.bf16.msrb.mxu3 %v1889_v61  ;;  %v2085_v61 = vld [vmem:[#allocation8 + $0x314] sm:$0xf0] }
 0x149   :  { %1180 = vmatpush.bf16.msra.mxu0 %v1829_v29 }
 0x14a   :  { %1196 = vmatpush.bf16.msra.mxu1 %v1869_v45  ;;  %v988_v45 = vperm.slane %v985_v44, 1 }
 0x14b   :  { %1168 = vmatpush.bf16.msrb.mxu3 %v1881_v20 }
 0x14d   :  { %1181 = vmatpush.bf16.msra.mxu0 %v1821_v39  ;;  %v2116_v39 = vld [vmem:[#allocation11 + $0x10] sm:$0xff] }
 0x14e   :  { %1197 = vmatpush.bf16.msra.mxu1 %v1861_v59 }
 0x14f   :  { %1169 = vmatpush.bf16.msrb.mxu3 %v1873_v30 }
 0x151   :  { %1182 = vmatpush.bf16.msra.mxu0 %v1813_v53  ;;  %v987_v53 = vperm.slane %v985_v44, 0 }
 0x153   :  { %1170 = vmatpush.bf16.msrb.mxu3 %v1865_v42  ;;  %v2114_v42 = vld [vmem:[#allocation11] sm:$0xff] }
 0x1ae   :  { %v685_v55 = vpop.f32.mrf.mxu1 }
 0x1b4   :  { %v659_v0 = vpop.f32.mrf.mxu3  ;;  %v672_v1 = vpop.f32.mrf.mxu0 }
 0x1b5   :  { %v673_v2 = vadd.f32 %v672_v1, %v474_v62  ;;  %v1801_v62 = vor.u32 %v2085_v61, %v1800_v60 }
 0x1b6   :  { %v687_v3 = vpop.f32.mrf.mxu1 }
 0x1b7   :  { %v686_v4 = vadd.f32 %v685_v55, %v673_v2  ;;  %v2099_v55 = vld [vmem:[#allocation8 + $0x384] sm:$0xf0]  ;;  %v1792_v2 = vld [vmem:[#allocation8 + $0x300] sm:$0xf] }
 0x1b8   :  { %v1857_v57 = vor.u32 %v2099_v55, %v1856_v54  ;;  %v2083_v3 = vld [vmem:[#allocation8 + $0x304] sm:$0xf0] }
 0x1b9   :  { %v690_v6 = vadd.f32 %v686_v4, %v2397_v49  ;;  %v2082_v4 = vld [vmem:[#allocation8 + $0x304] sm:$0xf] }
 0x1ba   :  { %v646_v7 = vpop.f32.mrf.mxu2  ;;  %1171 = vmatpush.bf16.msrb.mxu3 %v1857_v57 }
 0x1bb   :  { %v2404_v8 = vmax.f32 %v690_v6, 0.0  ;;  %v647_v9 = vadd.f32 %v646_v7, %v473_v5  ;;  %v1793_v5 = vor.u32 %v2083_v3, %v1792_v2  ;;  %v1794_v6 = vld [vmem:[#allocation8 + $0x308] sm:$0xf0]  ;;  %v2143_v3 = vld [vmem:[%s2427_s6] ss:$0 sm:$0xff] }
 0x1bc   :  { %v661_v10 = vpop.f32.mrf.mxu3  ;;  %v674_v11 = vpop.f32.mrf.mxu0  ;;  %v1797_v7 = vor.u32 %v2082_v4, %v1794_v6 }
 0x1bd   :  { %v694_v12 = vpack.c.bf16 %v2404_v8, %v2404_v8  ;;  %v660_v13 = vadd.f32 %v659_v0, %v647_v9  ;;  %v1802_v0 = vld [vmem:[#allocation8 + $0x318] sm:$0xf0]  ;;  %v2129_v9 = vld [vmem:[#allocation11 + $0x78] sm:$0xff] }
 0x1be   :  { %v1805_v1 = vor.u32 %v2084_v63, %v1802_v0  ;;  %v2121_v10 = vld [vmem:[#allocation11 + $0x38] sm:$0xff]  ;;  %v2128_v11 = vld [vmem:[#allocation11 + $0x70] sm:$0xff] }
 0x1bf   :  { %v689_v14 = vadd.f32 %v660_v13, %v2395_v48  ;;  %916 = vmatmul.bf16.vlgmr.msra.gmra.mxu3 %v694_v12  ;;  %942 = vmatmul.bf16.vlgmr.msrb.gmra.mxu1 %v694_v12  ;;  %v1825_v48 = vor.u32 %v2091_v24, %v1824_v23  ;;  %v2120_v12 = vld [vmem:[#allocation11 + $0x30] sm:$0xff]  ;;  %v2127_v13 = vld [vmem:[#allocation11 + $0x68] sm:$0xff] }
 0x1c0   :  { %1183 = vmatpush.bf16.msra.mxu0 %v1805_v1  ;;  %1354 = vmatpush.bf16.msra.mxu3 %v2129_v9 }
 0x1c1   :  { %v2409_v15 = vmax.f32 %v689_v14, 0.0  ;;  %1154 = vmatpush.bf16.msrb.mxu2 %v1825_v48  ;;  %v2126_v14 = vld [vmem:[#allocation11 + $0x60] sm:$0xff] }
 0x1c2   :  { %v648_v16 = vpop.f32.mrf.mxu2 }
 0x1c3   :  { %v693_v49 = vpack.c.bf16 %v2409_v15, %v2409_v15 }
 0x1c4   :  { %1184 = vmatpush.bf16.msra.mxu0 %v1797_v7  ;;  %1355 = vmatpush.bf16.msra.mxu3 %v2128_v11 }
 0x1c5   :  { %903 = vmatmul.bf16.vlgmr.msra.gmra.mxu2 %v693_v49  ;;  %929 = vmatmul.bf16.vlgmr.msrb.gmra.mxu0 %v693_v49  ;;  %v729_v49 = vld [vmem:[#allocation10 + $0x4] sm:$0x3] }
 0x1c6   :  { %1155 = vmatpush.bf16.msrb.mxu2 %v1817_v37  ;;  %v732_v17 = vperm.slane %v729_v49, 1  ;;  %v731_v23 = vperm.slane %v729_v49, 0  ;;  %v2117_v37 = vld [vmem:[#allocation11 + $0x18] sm:$0xff] }
 0x1c8   :  { %1356 = vmatpush.bf16.msra.mxu3 %v2127_v13 }
 0x1ca   :  { %1156 = vmatpush.bf16.msrb.mxu2 %v1809_v51 }
 0x1cc   :  { %1357 = vmatpush.bf16.msra.mxu3 %v2126_v14 }
 0x1ce   :  { %1157 = vmatpush.bf16.msrb.mxu2 %v1801_v62 }
 0x1d0   :  { %1358 = vmatpush.bf16.msra.mxu3 %v2125_v34 }
 0x1d2   :  { %1158 = vmatpush.bf16.msrb.mxu2 %v1793_v5 }
 0x1d4   :  { %1359 = vmatpush.bf16.msra.mxu3 %v2124_v36 }
 0x1d6   :  { %1341 = vmatpush.bf16.msra.mxu2 %v2121_v10 }
 0x1d8   :  { %1360 = vmatpush.bf16.msra.mxu3 %v2123_v38 }
 0x1da   :  { %1342 = vmatpush.bf16.msra.mxu2 %v2120_v12 }
 0x1dc   :  { %1361 = vmatpush.bf16.msra.mxu3 %v2122_v40 }
 0x1de   :  { %1343 = vmatpush.bf16.msra.mxu2 %v2119_v33 }
 0x1e2   :  { %1344 = vmatpush.bf16.msra.mxu2 %v2118_v35 }
 0x1e6   :  { %1345 = vmatpush.bf16.msra.mxu2 %v2117_v37 }
 0x1ea   :  { %1346 = vmatpush.bf16.msra.mxu2 %v2116_v39 }
 0x1ee   :  { %1347 = vmatpush.bf16.msra.mxu2 %v2115_v41 }
 0x1f2   :  { %1348 = vmatpush.bf16.msra.mxu2 %v2114_v42 }
 0x23c   :  { %v943_v16 = vpop.f32.mrf.mxu1 }
 0x242   :  { %v917_v18 = vpop.f32.mrf.mxu3  ;;  %v930_v19 = vpop.f32.mrf.mxu0 }
 0x243   :  { %v931_v20 = vadd.f32 %v930_v19, %v732_v17 }
 0x244   :  { %v945_v21 = vpop.f32.mrf.mxu1 }
 0x245   :  { %v944_v22 = vadd.f32 %v943_v16, %v931_v20 }
 0x247   :  { %v948_v24 = vmax.f32 %v944_v22, 0.0 }
 0x248   :  { %v904_v25 = vpop.f32.mrf.mxu2 }
 0x249   :  { %v950_v48 = vpack.c.bf16 %v948_v24, %v948_v24  ;;  %v905_v26 = vadd.f32 %v904_v25, %v731_v23 }
 0x24a   :  { %v919_v27 = vpop.f32.mrf.mxu3  ;;  %v932_v28 = vpop.f32.mrf.mxu0 }
 0x24b   :  { %v918_v29 = vadd.f32 %v917_v18, %v905_v26  ;;  %1172 = vmatmul.bf16.vlgmr.msrb.gmra.mxu3 %v950_v48  ;;  %1198 = vmatmul.bf16.vlgmr.msra.gmra.mxu1 %v950_v48 }
 0x24d   :  { %v947_v30 = vmax.f32 %v918_v29, 0.0 }
 0x24f   :  { %v949_v31 = vpack.c.bf16 %v947_v30, %v947_v30 }
 0x250   :  { %v906_v32 = vpop.f32.mrf.mxu2 }
 0x251   :  { %1159 = vmatmul.bf16.vlgmr.msrb.gmra.mxu2 %v949_v31  ;;  %1185 = vmatmul.bf16.vlgmr.msra.gmra.mxu0 %v949_v31 }
 0x2c8   :  { %v1199_v43 = vpop.f32.mrf.mxu1 }
 0x2ce   :  { %v1173_v46 = vpop.f32.mrf.mxu3  ;;  %v1186_v47 = vpop.f32.mrf.mxu0 }
 0x2cf   :  { %v1187_v50 = vadd.f32 %v1186_v47, %v988_v45 }
 0x2d0   :  { %v1201_v51 = vpop.f32.mrf.mxu1 }
 0x2d1   :  { %v1200_v52 = vadd.f32 %v1199_v43, %v1187_v50 }
 0x2d3   :  { %v1204_v54 = vadd.f32 %v1200_v52, %v2404_v8 }
 0x2d4   :  { %v1160_v55 = vpop.f32.mrf.mxu2 }
 0x2d5   :  { %v1206_v56 = vmax.f32 %v1204_v54, 0.0  ;;  %v1161_v57 = vadd.f32 %v1160_v55, %v987_v53 }
 0x2d6   :  { %v1175_v58 = vpop.f32.mrf.mxu3  ;;  %v1188_v59 = vpop.f32.mrf.mxu0 }
 0x2d7   :  { %v1208_v60 = vpack.c.bf16 %v1206_v56, %v1206_v56  ;;  %v1174_v61 = vadd.f32 %v1173_v46, %v1161_v57 }
 0x2d9   :  { %v1203_v62 = vadd.f32 %v1174_v61, %v2409_v15  ;;  %1362 = vmatmul.bf16.vlgmr.msra.gmra.mxu3 %v1208_v60 }
 0x2db   :  { %v1205_v63 = vmax.f32 %v1203_v62, 0.0 }
 0x2dc   :  { %v1162_v0 = vpop.f32.mrf.mxu2 }
 0x2dd   :  { %v1207_v1 = vpack.c.bf16 %v1205_v63, %v1205_v63 }
 0x2df   :  { %1349 = vmatmul.bf16.vlgmr.msra.gmra.mxu2 %v1207_v1 }
 0x35c   :  { %v1363_v2 = vpop.f32.mrf.mxu3 }
 0x362   :  { %v1350_v8 = vpop.f32.mrf.mxu2 }
 0x363   :  { %v1351_v4 = vadd.f32 %v2143_v3, %v1350_v8 }
 0x364   :  { %v1365_v5 = vpop.f32.mrf.mxu3 }
 0x365   :  { %v1364_v15 = vadd.f32 %v1363_v2, %v1351_v4 }
 0x367   :  { %1367 = vst [vmem:[#allocation13] sm:$0xff] %v1364_v15 }
 0x368   :  { %1378 = dma.vmem_to_hbm [thread:$0]  %s1374_s11, 128, %s1376_s14, [#allocation4]  }
 0x36a   :  { %v1352_v6 = vpop.f32.mrf.mxu2 }
 0x36b   :  { %2320 = dma.done.wait [#allocation4], 128  }
 0x36c   :  { %2321 = vsyncadd [#allocation4], 4294967168 }
 0x36d   :  { %1383 = vsyncpa [#allocation3], 1 }
 0x36e   :  { %1384 = vsyncpa [#allocation6], 1 }
 0x36f   :  { %1385 = vsyncpa [#allocation9], 1 }
 0x370   :  { %1386 = vsyncpa [#allocation12], 1 }
 0x371   :  { %1387 = vsyncpa [#allocation4], 1 }

// kernel: tpu_custom_call.1
= control target key start
LH: loop header
LB: loop body
LE: loop exit
PB: predicated region body
PF: predicated region fallthrough
CT: control target
= control target key end

     0   :  { %12 = vsyncpa [#allocation3], 0  ;;  %s2421_s0 = inlined_call_operand.hbm [shape: bf16[8,32], index: 0, kind: input, shape index: {}]   ;;  %s2422_s1 = inlined_call_operand.hbm [shape: bf16[32,256], index: 1, kind: input, shape index: {}]   ;;  %s2423_s2 = inlined_call_operand.hbm [shape: f32[1,256], index: 2, kind: input, shape index: {}]   ;;  %s2424_s3 = inlined_call_operand.hbm [shape: bf16[4,256,256], index: 3, kind: input, shape index: {}]   ;;  %s2425_s4 = inlined_call_operand.hbm [shape: f32[4,1,256], index: 4, kind: input, shape index: {}]   ;;  %s2426_s5 = inlined_call_operand.hbm [shape: bf16[256,128], index: 5, kind: input, shape index: {}]   ;;  %s2427_s6 = inlined_call_operand.vmem [shape: f32[1,128], index: 6, kind: input, shape index: {}]   ;;  %s2428_s7 = inlined_call_operand.hbm [shape: f32[8,128], index: 7, kind: output, shape index: {}]  }
   0x1   :  { %13 = vsyncpa [#allocation6], 0 }
   0x2   :  { %14 = vsyncpa [#allocation9], 0 }
   0x3   :  { %15 = vsyncpa [#allocation12], 0  ;;  %s32_s26 = sshll.u32 %s2422_s1, 4  ;;  %s33_s26 = int_to_ptr.hbm [resolvable:$true] %s32_s26 }
   0x4   :  { %16 = vsyncpa [#allocation4], 0  ;;  %s2322_s27 = smov [#allocation5]   ;;  %s56_s8 = sshll.u32 %s2424_s3, 4  ;;  %s57_s8 = int_to_ptr.hbm [resolvable:$true] %s56_s8 }
   0x5   :  { %s34_s28 = sshll.u32 %s2322_s27, 4  ;;  %s2323_s9 = smov 128   ;;  %s35_s28 = int_to_ptr.vmem [resolvable:$true] %s34_s28 }
   0x6   :  { %s2324_s10 = smov 8   ;;  %s2325_s11 = smov [#allocation8]  }
   0x7   :  { %40 = dma.hbm_to_vmem [thread:$0]  %s33_s26, 512, %s35_s28, [#allocation6], %s2323_s9, %s2323_s9, %s2324_s10  }
   0x8   :  { %s58_s12 = sshll.u32 %s2325_s11, 4  ;;  %s22_s15 = sshll.u32 %s2421_s0, 4  ;;  %s59_s12 = int_to_ptr.vmem [resolvable:$true] %s58_s12  ;;  %s23_s15 = int_to_ptr.hbm [resolvable:$true] %s22_s15 }
   0x9   :  { %64 = dma.hbm_to_vmem [thread:$0]  %s57_s8, 16384, %s59_s12, [#allocation9], %s2323_s9, %s2323_s9, %s2324_s10  }
   0xa   :  { %s46_s17 = sshll.u32 %s2423_s2, 4  ;;  %s2326_s18 = smov [#allocation2]   ;;  %s47_s17 = int_to_ptr.hbm [resolvable:$true] %s46_s17 }
   0xb   :  { %s24_s19 = sshll.u32 %s2326_s18, 4  ;;  %s2327_s3 = smov [#allocation7]   ;;  %s25_s19 = int_to_ptr.vmem [resolvable:$true] %s24_s19 }
   0xc   :  { %27 = dma.hbm_to_vmem [thread:$0]  %s23_s15, 64, %s25_s19, [#allocation3]  }
   0xd   :  { %s48_s20 = sshll.u32 %s2327_s3, 4  ;;  %s69_s23 = sshll.u32 %s2425_s4, 4  ;;  %s49_s20 = int_to_ptr.vmem [resolvable:$true] %s48_s20  ;;  %s70_s23 = int_to_ptr.hbm [resolvable:$true] %s69_s23 }
   0xe   :  { %51 = dma.hbm_to_vmem [thread:$0]  %s47_s17, 32, %s49_s20, [#allocation6]  }
   0xf   :  { %s2328_s0 = smov [#allocation10]   ;;  %s82_s2 = sshll.u32 %s2426_s5, 4  ;;  %s83_s2 = int_to_ptr.hbm [resolvable:$true] %s82_s2 }
  0x10   :  { %s71_s24 = sshll.u32 %s2328_s0, 4  ;;  %s2329_s27 = smov 32   ;;  %s72_s24 = int_to_ptr.vmem [resolvable:$true] %s71_s24 }
  0x11   :  { %s2330_s28 = smov 2   ;;  %s2331_s29 = smov [#allocation11]  }
  0x12   :  { %77 = dma.hbm_to_vmem [thread:$0]  %s70_s23, 128, %s72_s24, [#allocation9], %s2329_s27, %s2329_s27, %s2330_s28  }
  0x13   :  { %s84_s30 = sshll.u32 %s2331_s29, 4  ;;  %s2332_s8 = smov 64   ;;  %s85_s30 = int_to_ptr.vmem [resolvable:$true] %s84_s30 }
  0x14   :  { %s2333_s9 = smov 4  }
  0x15   :  { %90 = dma.hbm_to_vmem [thread:$0]  %s83_s2, 2048, %s85_s30, [#allocation12], %s2332_s8, %s2332_s8, %s2333_s9  }
  0x16   :  { %2312 = dma.done.wait [#allocation3], 64  }
  0x17   :  { %2313 = vsyncadd [#allocation3], 4294967232 }
  0x18   :  { %2314 = dma.done.wait [#allocation6], 544  }
  0x19   :  { %2315 = vsyncadd [#allocation6], 4294966752 }
  0x1a   :  { %2316 = dma.done.wait [#allocation9], 16512  }
  0x1b   :  { %2317 = vsyncadd [#allocation9], 4294950784 }
  0x1c   :  { %2318 = dma.done.wait [#allocation12], 2048  }
  0x1d   :  { %2319 = vsyncadd [#allocation12], 4294965248  ;;  %v1398_v0 = vld [vmem:[#allocation5 + $0x10] sm:$0xf]  ;;  %v1985_v1 = vld [vmem:[#allocation5 + $0x14] sm:$0xf0] }
  0x1e   :  { %v1984_v2 = vld [vmem:[#allocation5 + $0x14] sm:$0xf]  ;;  %v1399_v3 = vor.u32 %v1985_v1, %v1398_v0  ;;  %v1400_v4 = vld [vmem:[#allocation5 + $0x18] sm:$0xf0]  ;;  %v1390_v5 = vld [vmem:[#allocation5] sm:$0xf] }
  0x1f   :  { %v1983_v6 = vld [vmem:[#allocation5 + $0x4] sm:$0xf0]  ;;  %v1403_v7 = vor.u32 %v1984_v2, %v1400_v4  ;;  %v1982_v8 = vld [vmem:[#allocation5 + $0x4] sm:$0xf]  ;;  %v1392_v9 = vld [vmem:[#allocation5 + $0x8] sm:$0xf0] }
  0x20   :  { %vm149_vm0 = vcmask 261120   ;;  %159 = vmatpush.bf16.msra.mxu0 %v1399_v3  ;;  %v1391_v10 = vor.u32 %v1983_v6, %v1390_v5  ;;  %v1464_v11 = vld [vmem:[#allocation8 + $0x70] sm:$0xf]  ;;  %v2001_v12 = vld [vmem:[#allocation8 + $0x74] sm:$0xf0]  ;;  %v1395_v14 = vor.u32 %v1982_v8, %v1392_v9  ;;  %s2334_s10 = smov [#allocation13]  }
  0x21   :  { %v1528_v13 = vld [vmem:[#allocation8 + $0xf0] sm:$0xf]  ;;  %172 = vmatpush.bf16.msra.mxu1 %v1403_v7  ;;  %v1465_v15 = vor.u32 %v2001_v12, %v1464_v11  ;;  %v2017_v16 = vld [vmem:[#allocation8 + $0xf4] sm:$0xf0]  ;;  %v2000_v17 = vld [vmem:[#allocation8 + $0x74] sm:$0xf] }
  0x22   :  { %v1466_v18 = vld [vmem:[#allocation8 + $0x78] sm:$0xf0]  ;;  %v1529_v20 = vor.u32 %v2017_v16, %v1528_v13  ;;  %v2016_v22 = vld [vmem:[#allocation8 + $0xf4] sm:$0xf]  ;;  %v1456_v24 = vld [vmem:[#allocation8 + $0x60] sm:$0xf] }
  0x23   :  { %v118_v19 = vld [vmem:[#allocation2] sm:$0xf]  ;;  %v1469_v21 = vor.u32 %v2000_v17, %v1466_v18  ;;  %381 = vmatpush.bf16.msra.mxu2 %v1465_v15  ;;  %v1999_v26 = vld [vmem:[#allocation8 + $0x64] sm:$0xf0]  ;;  %v1520_v27 = vld [vmem:[#allocation8 + $0xe0] sm:$0xf] }
  0x24   :  { %v1530_v23 = vld [vmem:[#allocation8 + $0xf8] sm:$0xf0]  ;;  %v2015_v28 = vld [vmem:[#allocation8 + $0xe4] sm:$0xf0]  ;;  %160 = vmatpush.bf16.msra.mxu0 %v1391_v10  ;;  %394 = vmatpush.bf16.msra.mxu3 %v1529_v20  ;;  %v1457_v29 = vor.u32 %v1999_v26, %v1456_v24  ;;  %v1998_v31 = vld [vmem:[#allocation8 + $0x64] sm:$0xf] }
  0x25   :  { %v1533_v25 = vor.u32 %v2016_v22, %v1530_v23  ;;  %v1521_v30 = vor.u32 %v2015_v28, %v1520_v27  ;;  %v1458_v32 = vld [vmem:[#allocation8 + $0x68] sm:$0xf0]  ;;  %v2014_v33 = vld [vmem:[#allocation8 + $0xe4] sm:$0xf]  ;;  %173 = vmatpush.bf16.msra.mxu1 %v1395_v14  ;;  %v1448_v36 = vld [vmem:[#allocation8 + $0x50] sm:$0xf] }
  0x26   :  { %v1461_v34 = vor.u32 %v1998_v31, %v1458_v32  ;;  %v1522_v35 = vld [vmem:[#allocation8 + $0xe8] sm:$0xf0]  ;;  %v1997_v37 = vld [vmem:[#allocation8 + $0x54] sm:$0xf0]  ;;  %v1512_v39 = vld [vmem:[#allocation8 + $0xd0] sm:$0xf] }
  0x27   :  { %v1525_v38 = vor.u32 %v2014_v33, %v1522_v35  ;;  %v2013_v40 = vld [vmem:[#allocation8 + $0xd4] sm:$0xf0]  ;;  %v1996_v41 = vld [vmem:[#allocation8 + $0x54] sm:$0xf]  ;;  %1404 = vmatmul.msk.bf16.vlgmr.msra.gmra.mxu0 %vm149_vm0, %v118_v19  ;;  %382 = vmatpush.bf16.msra.mxu2 %v1457_v29  ;;  %v1449_v42 = vor.u32 %v1997_v37, %v1448_v36  ;;  %v1450_v43 = vld [vmem:[#allocation8 + $0x58] sm:$0xf0] }
  0x28   :  { %407 = vmatpush.bf16.msrb.mxu0 %v1469_v21  ;;  %v2012_v44 = vld [vmem:[#allocation8 + $0xd4] sm:$0xf]  ;;  %v1514_v45 = vld [vmem:[#allocation8 + $0xd8] sm:$0xf0]  ;;  %1405 = vmatmul.msk.bf16.vlgmr.msra.gmra.mxu1 %vm149_vm0, %v118_v19  ;;  %v1513_v46 = vor.u32 %v2013_v40, %v1512_v39  ;;  %v1440_v47 = vld [vmem:[#allocation8 + $0x40] sm:$0xf]  ;;  %v1453_v49 = vor.u32 %v1996_v41, %v1450_v43 }
  0x29   :  { %420 = vmatpush.bf16.msrb.mxu1 %v1533_v25  ;;  %395 = vmatpush.bf16.msra.mxu3 %v1521_v30  ;;  %v1995_v48 = vld [vmem:[#allocation8 + $0x44] sm:$0xf0]  ;;  %v1504_v50 = vld [vmem:[#allocation8 + $0xc0] sm:$0xf]  ;;  %v1517_v52 = vor.u32 %v2012_v44, %v1514_v45  ;;  %v1994_v53 = vld [vmem:[#allocation8 + $0x44] sm:$0xf] }
  0x2a   :  { %v2011_v51 = vld [vmem:[#allocation8 + $0xc4] sm:$0xf0]  ;;  %v1442_v54 = vld [vmem:[#allocation8 + $0x48] sm:$0xf0]  ;;  %v1441_v55 = vor.u32 %v1995_v48, %v1440_v47  ;;  %v2010_v56 = vld [vmem:[#allocation8 + $0xc4] sm:$0xf] }
  0x2b   :  { %383 = vmatpush.bf16.msra.mxu2 %v1449_v42  ;;  %v1506_v57 = vld [vmem:[#allocation8 + $0xc8] sm:$0xf0]  ;;  %v1505_v58 = vor.u32 %v2011_v51, %v1504_v50  ;;  %v1432_v59 = vld [vmem:[#allocation8 + $0x30] sm:$0xf]  ;;  %v1993_v60 = vld [vmem:[#allocation8 + $0x34] sm:$0xf0]  ;;  %v1445_v61 = vor.u32 %v1994_v53, %v1442_v54 }
  0x2c   :  { %408 = vmatpush.bf16.msrb.mxu0 %v1461_v34  ;;  %v1496_v62 = vld [vmem:[#allocation8 + $0xb0] sm:$0xf]  ;;  %v2009_v63 = vld [vmem:[#allocation8 + $0xb4] sm:$0xf0]  ;;  %v1509_v0 = vor.u32 %v2010_v56, %v1506_v57  ;;  %v1992_v1 = vld [vmem:[#allocation8 + $0x34] sm:$0xf]  ;;  %v1433_v3 = vor.u32 %v1993_v60, %v1432_v59 }
  0x2d   :  { %421 = vmatpush.bf16.msrb.mxu1 %v1525_v38  ;;  %396 = vmatpush.bf16.msra.mxu3 %v1513_v46  ;;  %v1434_v2 = vld [vmem:[#allocation8 + $0x38] sm:$0xf0]  ;;  %v2008_v4 = vld [vmem:[#allocation8 + $0xb4] sm:$0xf]  ;;  %v1497_v6 = vor.u32 %v2009_v63, %v1496_v62  ;;  %v1424_v7 = vld [vmem:[#allocation8 + $0x20] sm:$0xf] }
  0x2e   :  { %v1498_v5 = vld [vmem:[#allocation8 + $0xb8] sm:$0xf0]  ;;  %v1991_v8 = vld [vmem:[#allocation8 + $0x24] sm:$0xf0]  ;;  %v1437_v9 = vor.u32 %v1992_v1, %v1434_v2  ;;  %v1488_v10 = vld [vmem:[#allocation8 + $0xa0] sm:$0xf] }
  0x2f   :  { %384 = vmatpush.bf16.msra.mxu2 %v1441_v55  ;;  %v2007_v11 = vld [vmem:[#allocation8 + $0xa4] sm:$0xf0]  ;;  %v1501_v12 = vor.u32 %v2008_v4, %v1498_v5  ;;  %v1990_v13 = vld [vmem:[#allocation8 + $0x24] sm:$0xf]  ;;  %v1426_v14 = vld [vmem:[#allocation8 + $0x28] sm:$0xf0]  ;;  %v1425_v15 = vor.u32 %v1991_v8, %v1424_v7 }
  0x30   :  { %409 = vmatpush.bf16.msrb.mxu0 %v1453_v49  ;;  %v2006_v16 = vld [vmem:[#allocation8 + $0xa4] sm:$0xf]  ;;  %v1490_v17 = vld [vmem:[#allocation8 + $0xa8] sm:$0xf0]  ;;  %v1489_v18 = vor.u32 %v2007_v11, %v1488_v10  ;;  %v1429_v19 = vor.u32 %v1990_v13, %v1426_v14  ;;  %v1416_v21 = vld [vmem:[#allocation8 + $0x10] sm:$0xf] }
  0x31   :  { %422 = vmatpush.bf16.msrb.mxu1 %v1517_v52  ;;  %397 = vmatpush.bf16.msra.mxu3 %v1505_v58  ;;  %v1493_v20 = vor.u32 %v2006_v16, %v1490_v17  ;;  %v1989_v22 = vld [vmem:[#allocation8 + $0x14] sm:$0xf0]  ;;  %v1480_v23 = vld [vmem:[#allocation8 + $0x90] sm:$0xf]  ;;  %v1988_v26 = vld [vmem:[#allocation8 + $0x14] sm:$0xf] }
  0x32   :  { %v1417_v24 = vor.u32 %v1989_v22, %v1416_v21  ;;  %v2005_v25 = vld [vmem:[#allocation8 + $0x94] sm:$0xf0]  ;;  %v1418_v27 = vld [vmem:[#allocation8 + $0x18] sm:$0xf0]  ;;  %v2004_v30 = vld [vmem:[#allocation8 + $0x94] sm:$0xf] }
  0x33   :  { %385 = vmatpush.bf16.msra.mxu2 %v1433_v3  ;;  %v1481_v28 = vor.u32 %v2005_v25, %v1480_v23  ;;  %v1421_v29 = vor.u32 %v1988_v26, %v1418_v27  ;;  %v1482_v31 = vld [vmem:[#allocation8 + $0x98] sm:$0xf0]  ;;  %v1408_v33 = vld [vmem:[#allocation8] sm:$0xf]  ;;  %v1987_v34 = vld [vmem:[#allocation8 + $0x4] sm:$0xf0] }
  0x34   :  { %410 = vmatpush.bf16.msrb.mxu0 %v1445_v61  ;;  %v1485_v32 = vor.u32 %v2004_v30, %v1482_v31  ;;  %v1472_v35 = vld [vmem:[#allocation8 + $0x80] sm:$0xf]  ;;  %v1409_v36 = vor.u32 %v1987_v34, %v1408_v33  ;;  %v2003_v37 = vld [vmem:[#allocation8 + $0x84] sm:$0xf0]  ;;  %v1986_v38 = vld [vmem:[#allocation8 + $0x4] sm:$0xf] }
  0x35   :  { %423 = vmatpush.bf16.msrb.mxu1 %v1509_v0  ;;  %398 = vmatpush.bf16.msra.mxu3 %v1497_v6  ;;  %v1410_v39 = vld [vmem:[#allocation8 + $0x8] sm:$0xf0]  ;;  %v1473_v40 = vor.u32 %v2003_v37, %v1472_v35  ;;  %v2002_v42 = vld [vmem:[#allocation8 + $0x84] sm:$0xf]  ;;  %v1656_v45 = vld [vmem:[#allocation8 + $0x1f0] sm:$0xf] }
  0x36   :  { %v1413_v41 = vor.u32 %v1986_v38, %v1410_v39  ;;  %v1474_v43 = vld [vmem:[#allocation8 + $0x88] sm:$0xf0]  ;;  %v2049_v46 = vld [vmem:[#allocation8 + $0x1f4] sm:$0xf0]  ;;  %v2048_v47 = vld [vmem:[#allocation8 + $0x1f4] sm:$0xf] }
  0x37   :  { %386 = vmatpush.bf16.msra.mxu2 %v1425_v15  ;;  %v1477_v44 = vor.u32 %v2002_v42, %v1474_v43  ;;  %v1657_v48 = vor.u32 %v2049_v46, %v1656_v45  ;;  %v1658_v49 = vld [vmem:[#allocation8 + $0x1f8] sm:$0xf0]  ;;  %v1648_v50 = vld [vmem:[#allocation8 + $0x1e0] sm:$0xf]  ;;  %v2047_v51 = vld [vmem:[#allocation8 + $0x1e4] sm:$0xf0] }
  0x38   :  { %411 = vmatpush.bf16.msrb.mxu0 %v1437_v9  ;;  %v1661_v52 = vor.u32 %v2048_v47, %v1658_v49  ;;  %v2046_v53 = vld [vmem:[#allocation8 + $0x1e4] sm:$0xf]  ;;  %v1650_v54 = vld [vmem:[#allocation8 + $0x1e8] sm:$0xf0]  ;;  %v1592_v55 = vld [vmem:[#allocation8 + $0x170] sm:$0xf]  ;;  %v1649_v56 = vor.u32 %v2047_v51, %v1648_v50 }
  0x39   :  { %424 = vmatpush.bf16.msrb.mxu1 %v1501_v12  ;;  %399 = vmatpush.bf16.msra.mxu3 %v1489_v18  ;;  %v2033_v57 = vld [vmem:[#allocation8 + $0x174] sm:$0xf0]  ;;  %v2032_v58 = vld [vmem:[#allocation8 + $0x174] sm:$0xf]  ;;  %v1594_v59 = vld [vmem:[#allocation8 + $0x178] sm:$0xf0]  ;;  %v1653_v60 = vor.u32 %v2046_v53, %v1650_v54 }
  0x3a   :  { %v1593_v61 = vor.u32 %v2033_v57, %v1592_v55  ;;  %v1597_v62 = vor.u32 %v2032_v58, %v1594_v59  ;;  %v1640_v63 = vld [vmem:[#allocation8 + $0x1d0] sm:$0xf]  ;;  %v2045_v0 = vld [vmem:[#allocation8 + $0x1d4] sm:$0xf0]  ;;  %v2044_v1 = vld [vmem:[#allocation8 + $0x1d4] sm:$0xf] }
  0x3b   :  { %387 = vmatpush.bf16.msra.mxu2 %v1417_v24  ;;  %v1642_v2 = vld [vmem:[#allocation8 + $0x1d8] sm:$0xf0]  ;;  %v1584_v3 = vld [vmem:[#allocation8 + $0x160] sm:$0xf]  ;;  %v2031_v4 = vld [vmem:[#allocation8 + $0x164] sm:$0xf0]  ;;  %v1641_v8 = vor.u32 %v2045_v0, %v1640_v63 }
  0x3c   :  { %412 = vmatpush.bf16.msrb.mxu0 %v1429_v19  ;;  %v1585_v5 = vor.u32 %v2031_v4, %v1584_v3  ;;  %v2030_v6 = vld [vmem:[#allocation8 + $0x164] sm:$0xf]  ;;  %v1586_v7 = vld [vmem:[#allocation8 + $0x168] sm:$0xf0]  ;;  %v1632_v10 = vld [vmem:[#allocation8 + $0x1c0] sm:$0xf]  ;;  %v1645_v12 = vor.u32 %v2044_v1, %v1642_v2 }
  0x3d   :  { %425 = vmatpush.bf16.msrb.mxu1 %v1493_v20  ;;  %400 = vmatpush.bf16.msra.mxu3 %v1481_v28  ;;  %v1589_v9 = vor.u32 %v2030_v6, %v1586_v7  ;;  %v2043_v11 = vld [vmem:[#allocation8 + $0x1c4] sm:$0xf0]  ;;  %v1576_v13 = vld [vmem:[#allocation8 + $0x150] sm:$0xf]  ;;  %v2029_v14 = vld [vmem:[#allocation8 + $0x154] sm:$0xf0] }
  0x3e   :  { %v2028_v15 = vld [vmem:[#allocation8 + $0x154] sm:$0xf]  ;;  %v2042_v16 = vld [vmem:[#allocation8 + $0x1c4] sm:$0xf]  ;;  %v1634_v17 = vld [vmem:[#allocation8 + $0x1c8] sm:$0xf0]  ;;  %v1577_v19 = vor.u32 %v2029_v14, %v1576_v13  ;;  %v1633_v22 = vor.u32 %v2043_v11, %v1632_v10 }
  0x3f   :  { %388 = vmatpush.bf16.msra.mxu2 %v1409_v36  ;;  %v1578_v18 = vld [vmem:[#allocation8 + $0x158] sm:$0xf0]  ;;  %v1568_v21 = vld [vmem:[#allocation8 + $0x140] sm:$0xf]  ;;  %v2027_v23 = vld [vmem:[#allocation8 + $0x144] sm:$0xf0]  ;;  %v1637_v26 = vor.u32 %v2042_v16, %v1634_v17 }
  0x40   :  { %413 = vmatpush.bf16.msrb.mxu0 %v1421_v29  ;;  %v1581_v20 = vor.u32 %v2028_v15, %v1578_v18  ;;  %v2026_v24 = vld [vmem:[#allocation8 + $0x144] sm:$0xf]  ;;  %v1570_v25 = vld [vmem:[#allocation8 + $0x148] sm:$0xf0]  ;;  %v1624_v27 = vld [vmem:[#allocation8 + $0x1b0] sm:$0xf]  ;;  %v1569_v31 = vor.u32 %v2027_v23, %v1568_v21 }
  0x41   :  { %426 = vmatpush.bf16.msrb.mxu1 %v1485_v32  ;;  %401 = vmatpush.bf16.msra.mxu3 %v1473_v40  ;;  %v2041_v28 = vld [vmem:[#allocation8 + $0x1b4] sm:$0xf0]  ;;  %v2040_v29 = vld [vmem:[#allocation8 + $0x1b4] sm:$0xf]  ;;  %v1626_v30 = vld [vmem:[#allocation8 + $0x1b8] sm:$0xf0]  ;;  %v1573_v32 = vor.u32 %v2026_v24, %v1570_v25 }
  0x42   :  { %v1625_v33 = vor.u32 %v2041_v28, %v1624_v27  ;;  %v1629_v34 = vor.u32 %v2040_v29, %v1626_v30  ;;  %v1616_v35 = vld [vmem:[#allocation8 + $0x1a0] sm:$0xf]  ;;  %v2039_v36 = vld [vmem:[#allocation8 + $0x1a4] sm:$0xf0]  ;;  %v123_v37 = vld [vmem:[#allocation7] sm:$0x3] }
  0x43   :  { %637 = vmatpush.bf16.msrb.mxu2 %v1593_v61  ;;  %v2038_v38 = vld [vmem:[#allocation8 + $0x1a4] sm:$0xf]  ;;  %v1618_v39 = vld [vmem:[#allocation8 + $0x1a8] sm:$0xf0]  ;;  %v1617_v40 = vor.u32 %v2039_v36, %v1616_v35  ;;  %v126_v43 = vperm.slane %v123_v37, 1  ;;  %s1373_s11 = sshll.u32 %s2334_s10, 4  ;;  %s1374_s11 = int_to_ptr.vmem [resolvable:$true] %s1373_s11 }
  0x44   :  { %414 = vmatpush.bf16.msrb.mxu0 %v1413_v41  ;;  %v125_v41 = vperm.slane %v123_v37, 0  ;;  %v1621_v42 = vor.u32 %v2038_v38, %v1618_v39  ;;  %v1560_v54 = vld [vmem:[#allocation8 + $0x130] sm:$0xf]  ;;  %v2025_v55 = vld [vmem:[#allocation8 + $0x134] sm:$0xf0]  ;;  %s1375_s14 = sshll.u32 %s2428_s7, 4  ;;  %s1376_s14 = int_to_ptr.hbm [resolvable:$true] %s1375_s14 }
  0x45   :  { %427 = vmatpush.bf16.msrb.mxu1 %v1477_v44  ;;  %650 = vmatpush.bf16.msrb.mxu3 %v1657_v48  ;;  %v1561_v57 = vor.u32 %v2025_v55, %v1560_v54  ;;  %v1562_v58 = vld [vmem:[#allocation8 + $0x138] sm:$0xf0]  ;;  %v2037_v61 = vld [vmem:[#allocation8 + $0x194] sm:$0xf0]  ;;  %v1552_v2 = vld [vmem:[#allocation8 + $0x120] sm:$0xf] }
  0x46   :  { %v1610_v0 = vld [vmem:[#allocation8 + $0x198] sm:$0xf0]  ;;  %v2023_v3 = vld [vmem:[#allocation8 + $0x124] sm:$0xf0]  ;;  %v2022_v4 = vld [vmem:[#allocation8 + $0x124] sm:$0xf] }
  0x47   :  { %638 = vmatpush.bf16.msrb.mxu2 %v1585_v5  ;;  %v1553_v5 = vor.u32 %v2023_v3, %v1552_v2  ;;  %v1554_v6 = vld [vmem:[#allocation8 + $0x128] sm:$0xf0]  ;;  %v2034_v10 = vld [vmem:[#allocation8 + $0x184] sm:$0xf]  ;;  %v1544_v14 = vld [vmem:[#allocation8 + $0x110] sm:$0xf] }
  0x48   :  { %663 = vmatpush.bf16.msra.mxu0 %v1597_v62  ;;  %v2036_v62 = vld [vmem:[#allocation8 + $0x194] sm:$0xf]  ;;  %v1557_v7 = vor.u32 %v2022_v4, %v1554_v6  ;;  %v2021_v15 = vld [vmem:[#allocation8 + $0x114] sm:$0xf0]  ;;  %v1546_v18 = vld [vmem:[#allocation8 + $0x118] sm:$0xf0] }
  0x49   :  { %676 = vmatpush.bf16.msra.mxu1 %v1661_v52  ;;  %651 = vmatpush.bf16.msrb.mxu3 %v1649_v56  ;;  %v2024_v56 = vld [vmem:[#allocation8 + $0x134] sm:$0xf]  ;;  %v1613_v1 = vor.u32 %v2036_v62, %v1610_v0  ;;  %v1545_v16 = vor.u32 %v2021_v15, %v1544_v14  ;;  %v2019_v21 = vld [vmem:[#allocation8 + $0x104] sm:$0xf0]  ;;  %v1538_v24 = vld [vmem:[#allocation8 + $0x108] sm:$0xf0] }
  0x4a   :  { %v1565_v59 = vor.u32 %v2024_v56, %v1562_v58  ;;  %v2020_v17 = vld [vmem:[#allocation8 + $0x114] sm:$0xf]  ;;  %v2081_v27 = vld [vmem:[#allocation8 + $0x2f4] sm:$0xf0]  ;;  %v1786_v30 = vld [vmem:[#allocation8 + $0x2f8] sm:$0xf0] }
  0x4b   :  { %639 = vmatpush.bf16.msrb.mxu2 %v1577_v19  ;;  %v1549_v19 = vor.u32 %v2020_v17, %v1546_v18  ;;  %v2080_v28 = vld [vmem:[#allocation8 + $0x2f4] sm:$0xf]  ;;  %v1778_v35 = vld [vmem:[#allocation8 + $0x2e8] sm:$0xf0]  ;;  %v1720_v36 = vld [vmem:[#allocation8 + $0x270] sm:$0xf] }
  0x4c   :  { %664 = vmatpush.bf16.msra.mxu0 %v1589_v9  ;;  %v2035_v9 = vld [vmem:[#allocation8 + $0x184] sm:$0xf0]  ;;  %v2065_v38 = vld [vmem:[#allocation8 + $0x274] sm:$0xf0]  ;;  %v2064_v39 = vld [vmem:[#allocation8 + $0x274] sm:$0xf] }
  0x4d   :  { %677 = vmatpush.bf16.msra.mxu1 %v1653_v60  ;;  %652 = vmatpush.bf16.msrb.mxu3 %v1641_v8  ;;  %v1608_v60 = vld [vmem:[#allocation8 + $0x190] sm:$0xf]  ;;  %v1600_v8 = vld [vmem:[#allocation8 + $0x180] sm:$0xf]  ;;  %v1714_v54 = vld [vmem:[#allocation8 + $0x268] sm:$0xf0] }
  0x4e   :  { %v1609_v63 = vor.u32 %v2037_v61, %v1608_v60  ;;  %v1601_v11 = vor.u32 %v2035_v9, %v1600_v8  ;;  %v1760_v58 = vld [vmem:[#allocation8 + $0x2c0] sm:$0xf]  ;;  %v2074_v60 = vld [vmem:[#allocation8 + $0x2c4] sm:$0xf]  ;;  %v1762_v61 = vld [vmem:[#allocation8 + $0x2c8] sm:$0xf0] }
  0x4f   :  { %640 = vmatpush.bf16.msrb.mxu2 %v1569_v31  ;;  %v1776_v31 = vld [vmem:[#allocation8 + $0x2e0] sm:$0xf]  ;;  %v1765_v0 = vor.u32 %v2074_v60, %v1762_v61  ;;  %v1682_v61 = vld [vmem:[#allocation8 + $0x228] sm:$0xf0] }
  0x50   :  { %665 = vmatpush.bf16.msra.mxu0 %v1581_v20  ;;  %v1536_v20 = vld [vmem:[#allocation8 + $0x100] sm:$0xf] }
  0x51   :  { %678 = vmatpush.bf16.msra.mxu1 %v1645_v12  ;;  %653 = vmatpush.bf16.msrb.mxu3 %v1633_v22  ;;  %v1602_v12 = vld [vmem:[#allocation8 + $0x188] sm:$0xf0]  ;;  %v2018_v22 = vld [vmem:[#allocation8 + $0x104] sm:$0xf]  ;;  %v1537_v23 = vor.u32 %v2019_v21, %v1536_v20  ;;  %v215_v62 = vld [vmem:[#allocation10] sm:$0x3] }
  0x52   :  { %v1605_v13 = vor.u32 %v2034_v10, %v1602_v12  ;;  %v1541_v25 = vor.u32 %v2018_v22, %v1538_v24  ;;  %v217_v6 = vperm.slane %v215_v62, 0  ;;  %v2061_v20 = vld [vmem:[#allocation8 + $0x254] sm:$0xf0]  ;;  %v2060_v21 = vld [vmem:[#allocation8 + $0x254] sm:$0xf] }
  0x53   :  { %641 = vmatpush.bf16.msrb.mxu2 %v1561_v57 }
  0x54   :  { %666 = vmatpush.bf16.msra.mxu0 %v1573_v32  ;;  %v2079_v32 = vld [vmem:[#allocation8 + $0x2e4] sm:$0xf0] }
  0x55   :  { %679 = vmatpush.bf16.msra.mxu1 %v1637_v26  ;;  %654 = vmatpush.bf16.msrb.mxu3 %v1625_v33  ;;  %v1784_v26 = vld [vmem:[#allocation8 + $0x2f0] sm:$0xf]  ;;  %v1789_v33 = vor.u32 %v2080_v28, %v1786_v30  ;;  %v1777_v37 = vor.u32 %v2079_v32, %v1776_v31  ;;  %v1696_v30 = vld [vmem:[#allocation8 + $0x240] sm:$0xf]  ;;  %v2059_v31 = vld [vmem:[#allocation8 + $0x244] sm:$0xf0] }
  0x56   :  { %v1785_v29 = vor.u32 %v2081_v27, %v1784_v26  ;;  %v2073_v26 = vld [vmem:[#allocation8 + $0x2b4] sm:$0xf0]  ;;  %v2072_v27 = vld [vmem:[#allocation8 + $0x2b4] sm:$0xf] }
  0x57   :  { %642 = vmatpush.bf16.msrb.mxu2 %v1553_v5 }
  0x58   :  { %667 = vmatpush.bf16.msra.mxu0 %v1565_v59  ;;  %v2075_v59 = vld [vmem:[#allocation8 + $0x2c4] sm:$0xf0] }
  0x59   :  { %680 = vmatpush.bf16.msra.mxu1 %v1629_v34  ;;  %655 = vmatpush.bf16.msrb.mxu3 %v1617_v40  ;;  %v2078_v34 = vld [vmem:[#allocation8 + $0x2e4] sm:$0xf]  ;;  %v1722_v40 = vld [vmem:[#allocation8 + $0x278] sm:$0xf0] }
  0x5b   :  { %643 = vmatpush.bf16.msrb.mxu2 %v1545_v16 }
  0x5c   :  { %668 = vmatpush.bf16.msra.mxu0 %v1557_v7 }
  0x5d   :  { %681 = vmatpush.bf16.msra.mxu1 %v1621_v42  ;;  %656 = vmatpush.bf16.msrb.mxu3 %v1609_v63  ;;  %v1721_v42 = vor.u32 %v2065_v38, %v1720_v36  ;;  %v1761_v63 = vor.u32 %v2075_v59, %v1760_v58  ;;  %v2071_v38 = vld [vmem:[#allocation8 + $0x2a4] sm:$0xf0]  ;;  %v2054_v59 = vld [vmem:[#allocation8 + $0x224] sm:$0xf] }
  0x5e   :  { %v2055_v58 = vld [vmem:[#allocation8 + $0x224] sm:$0xf0] }
  0x5f   :  { %644 = vmatpush.bf16.msrb.mxu2 %v1537_v23  ;;  %v1706_v23 = vld [vmem:[#allocation8 + $0x258] sm:$0xf0] }
  0x60   :  { %669 = vmatpush.bf16.msra.mxu0 %v1549_v19  ;;  %v1704_v19 = vld [vmem:[#allocation8 + $0x250] sm:$0xf]  ;;  %v1709_v24 = vor.u32 %v2060_v21, %v1706_v23  ;;  %v1914_v21 = vld [vmem:[#allocation8 + $0x3f8] sm:$0xf0]  ;;  %v2111_v23 = vld [vmem:[#allocation8 + $0x3e4] sm:$0xf0] }
  0x61   :  { %682 = vmatpush.bf16.msra.mxu1 %v1613_v1  ;;  %657 = vmatpush.bf16.msrb.mxu3 %v1601_v11  ;;  %v218_v1 = vperm.slane %v215_v62, 1  ;;  %v1705_v22 = vor.u32 %v2061_v20, %v1704_v19  ;;  %v1685_v62 = vor.u32 %v2054_v59, %v1682_v61  ;;  %v2112_v19 = vld [vmem:[#allocation8 + $0x3f4] sm:$0xf] }
  0x64   :  { %670 = vmatpush.bf16.msra.mxu0 %v1541_v25  ;;  %v1752_v25 = vld [vmem:[#allocation8 + $0x2b0] sm:$0xf] }
  0x65   :  { %683 = vmatpush.bf16.msra.mxu1 %v1605_v13  ;;  %v1753_v28 = vor.u32 %v2073_v26, %v1752_v25  ;;  %v2110_v25 = vld [vmem:[#allocation8 + $0x3e4] sm:$0xf]  ;;  %v1906_v26 = vld [vmem:[#allocation8 + $0x3e8] sm:$0xf0] }
  0xa4   :  { %v162_v44 = vpop.f32.mrf.mxu0 }
  0xa5   :  { %v163_v45 = vadd.f32 %v162_v44, %v125_v41  ;;  %v175_v46 = vpop.f32.mrf.mxu1  ;;  %v1781_v41 = vor.u32 %v2078_v34, %v1778_v35  ;;  %v1768_v44 = vld [vmem:[#allocation8 + $0x2d0] sm:$0xf]  ;;  %v2058_v34 = vld [vmem:[#allocation8 + $0x244] sm:$0xf]  ;;  %v1698_v35 = vld [vmem:[#allocation8 + $0x248] sm:$0xf0] }
  0xa6   :  { %v176_v47 = vadd.f32 %v175_v46, %v126_v43  ;;  %v1725_v43 = vor.u32 %v2064_v39, %v1722_v40  ;;  %v2076_v46 = vld [vmem:[#allocation8 + $0x2d4] sm:$0xf]  ;;  %v1701_v36 = vor.u32 %v2058_v34, %v1698_v35  ;;  %v2070_v39 = vld [vmem:[#allocation8 + $0x2a4] sm:$0xf]  ;;  %v1896_v35 = vld [vmem:[#allocation8 + $0x3d0] sm:$0xf] }
  0xa7   :  { %v2395_v48 = vmax.f32 %v163_v45, 0.0  ;;  %v2077_v45 = vld [vmem:[#allocation8 + $0x2d4] sm:$0xf0] }
  0xa8   :  { %v2397_v49 = vmax.f32 %v176_v47, 0.0  ;;  %v1770_v47 = vld [vmem:[#allocation8 + $0x2d8] sm:$0xf0]  ;;  %v1769_v55 = vor.u32 %v2077_v45, %v1768_v44  ;;  %v2057_v44 = vld [vmem:[#allocation8 + $0x234] sm:$0xf0] }
  0xa9   :  { %v181_v50 = vpack.c.bf16 %v2395_v48, %v2395_v48  ;;  %v1773_v57 = vor.u32 %v2076_v46, %v1770_v47  ;;  %v2056_v46 = vld [vmem:[#allocation8 + $0x234] sm:$0xf]  ;;  %v1690_v47 = vld [vmem:[#allocation8 + $0x238] sm:$0xf0] }
  0xaa   :  { %v182_v51 = vpack.c.bf16 %v2397_v49, %v2397_v49 }
  0xab   :  { %389 = vmatmul.bf16.vlgmr.msra.gmra.mxu2 %v181_v50  ;;  %415 = vmatmul.bf16.vlgmr.msrb.gmra.mxu0 %v181_v50  ;;  %v1712_v50 = vld [vmem:[#allocation8 + $0x260] sm:$0xf] }
  0xac   :  { %402 = vmatmul.bf16.vlgmr.msra.gmra.mxu3 %v182_v51  ;;  %428 = vmatmul.bf16.vlgmr.msrb.gmra.mxu1 %v182_v51  ;;  %v164_v52 = vpop.f32.mrf.mxu0  ;;  %v2063_v51 = vld [vmem:[#allocation8 + $0x264] sm:$0xf0] }
  0xad   :  { %v177_v53 = vpop.f32.mrf.mxu1  ;;  %908 = vmatpush.bf16.msra.mxu3 %v1785_v29  ;;  %934 = vmatpush.bf16.msrb.mxu1 %v1789_v33  ;;  %v1713_v52 = vor.u32 %v2063_v51, %v1712_v50  ;;  %v1754_v29 = vld [vmem:[#allocation8 + $0x2b8] sm:$0xf0]  ;;  %v1697_v33 = vor.u32 %v2059_v31, %v1696_v30  ;;  %v1693_v50 = vor.u32 %v2056_v46, %v1690_v47  ;;  %v1736_v51 = vld [vmem:[#allocation8 + $0x290] sm:$0xf]  ;;  %v2096_v30 = vld [vmem:[#allocation8 + $0x374] sm:$0xf] }
  0xae   :  { %895 = vmatpush.bf16.msra.mxu2 %v1721_v42  ;;  %921 = vmatpush.bf16.msrb.mxu0 %v1725_v43  ;;  %v2062_v53 = vld [vmem:[#allocation8 + $0x264] sm:$0xf]  ;;  %v1757_v32 = vor.u32 %v2072_v27, %v1754_v29  ;;  %v1688_v43 = vld [vmem:[#allocation8 + $0x230] sm:$0xf]  ;;  %v2097_v29 = vld [vmem:[#allocation8 + $0x374] sm:$0xf0] }
  0xaf   :  { %v1717_v56 = vor.u32 %v2062_v53, %v1714_v54  ;;  %v1689_v45 = vor.u32 %v2057_v44, %v1688_v43  ;;  %v2068_v53 = vld [vmem:[#allocation8 + $0x294] sm:$0xf]  ;;  %v1848_v27 = vld [vmem:[#allocation8 + $0x370] sm:$0xf]  ;;  %v1850_v31 = vld [vmem:[#allocation8 + $0x378] sm:$0xf0] }
  0xb0   :  { %v1853_v34 = vor.u32 %v2096_v30, %v1850_v31  ;;  %v1842_v43 = vld [vmem:[#allocation8 + $0x368] sm:$0xf0]  ;;  %v471_v44 = vld [vmem:[#allocation10 + $0x2] sm:$0x3]  ;;  %v2102_v31 = vld [vmem:[#allocation8 + $0x3a4] sm:$0xf] }
  0xb1   :  { %909 = vmatpush.bf16.msra.mxu3 %v1777_v37  ;;  %935 = vmatpush.bf16.msrb.mxu1 %v1781_v41  ;;  %v1744_v37 = vld [vmem:[#allocation8 + $0x2a0] sm:$0xf]  ;;  %v1746_v41 = vld [vmem:[#allocation8 + $0x2a8] sm:$0xf0] }
  0xb2   :  { %896 = vmatpush.bf16.msra.mxu2 %v1713_v52  ;;  %922 = vmatpush.bf16.msrb.mxu0 %v1717_v56  ;;  %v1745_v40 = vor.u32 %v2071_v38, %v1744_v37  ;;  %v1749_v42 = vor.u32 %v2070_v39, %v1746_v41  ;;  %v2069_v52 = vld [vmem:[#allocation8 + $0x294] sm:$0xf0]  ;;  %v2108_v37 = vld [vmem:[#allocation8 + $0x3d4] sm:$0xf]  ;;  %v1898_v38 = vld [vmem:[#allocation8 + $0x3d8] sm:$0xf0] }
  0xb3   :  { %v1737_v54 = vor.u32 %v2069_v52, %v1736_v51  ;;  %v1840_v39 = vld [vmem:[#allocation8 + $0x360] sm:$0xf]  ;;  %v1901_v51 = vor.u32 %v2108_v37, %v1898_v38  ;;  %v1832_v52 = vld [vmem:[#allocation8 + $0x350] sm:$0xf]  ;;  %v1818_v38 = vld [vmem:[#allocation8 + $0x338] sm:$0xf0] }
  0xb4   :  { %v1888_v47 = vld [vmem:[#allocation8 + $0x3c0] sm:$0xf] }
  0xb5   :  { %910 = vmatpush.bf16.msra.mxu3 %v1769_v55  ;;  %936 = vmatpush.bf16.msrb.mxu1 %v1773_v57  ;;  %v1738_v55 = vld [vmem:[#allocation8 + $0x298] sm:$0xf0]  ;;  %v1680_v57 = vld [vmem:[#allocation8 + $0x220] sm:$0xf] }
  0xb6   :  { %897 = vmatpush.bf16.msra.mxu2 %v1705_v22  ;;  %923 = vmatpush.bf16.msrb.mxu0 %v1709_v24  ;;  %v1741_v56 = vor.u32 %v2068_v53, %v1738_v55  ;;  %v1681_v60 = vor.u32 %v2055_v58, %v1680_v57  ;;  %v1904_v22 = vld [vmem:[#allocation8 + $0x3e0] sm:$0xf]  ;;  %v1917_v24 = vor.u32 %v2112_v19, %v1914_v21  ;;  %v2093_v53 = vld [vmem:[#allocation8 + $0x354] sm:$0xf0]  ;;  %v1890_v57 = vld [vmem:[#allocation8 + $0x3c8] sm:$0xf0] }
  0xb7   :  { %v1834_v58 = vld [vmem:[#allocation8 + $0x358] sm:$0xf0]  ;;  %v1833_v59 = vor.u32 %v2093_v53, %v1832_v52  ;;  %v2104_v19 = vld [vmem:[#allocation8 + $0x3b4] sm:$0xf]  ;;  %v1810_v52 = vld [vmem:[#allocation8 + $0x328] sm:$0xf0] }
  0xb8   :  { %v1882_v21 = vld [vmem:[#allocation8 + $0x3b8] sm:$0xf0] }
  0xb9   :  { %911 = vmatpush.bf16.msra.mxu3 %v1761_v63  ;;  %937 = vmatpush.bf16.msrb.mxu1 %v1765_v0  ;;  %v1728_v63 = vld [vmem:[#allocation8 + $0x280] sm:$0xf]  ;;  %v2067_v0 = vld [vmem:[#allocation8 + $0x284] sm:$0xf0] }
  0xba   :  { %898 = vmatpush.bf16.msra.mxu2 %v1697_v33  ;;  %924 = vmatpush.bf16.msrb.mxu0 %v1701_v36  ;;  %v1849_v33 = vor.u32 %v2097_v29, %v1848_v27  ;;  %v2109_v36 = vld [vmem:[#allocation8 + $0x3d4] sm:$0xf0]  ;;  %v1872_v27 = vld [vmem:[#allocation8 + $0x3a0] sm:$0xf] }
  0xbd   :  { %912 = vmatpush.bf16.msra.mxu3 %v1753_v28  ;;  %938 = vmatpush.bf16.msrb.mxu1 %v1757_v32  ;;  %v1905_v28 = vor.u32 %v2111_v23, %v1904_v22  ;;  %v1909_v32 = vor.u32 %v2110_v25, %v1906_v26  ;;  %v1885_v22 = vor.u32 %v2104_v19, %v1882_v21  ;;  %v1824_v23 = vld [vmem:[#allocation8 + $0x340] sm:$0xf]  ;;  %v2090_v25 = vld [vmem:[#allocation8 + $0x344] sm:$0xf]  ;;  %v1826_v26 = vld [vmem:[#allocation8 + $0x348] sm:$0xf0] }
  0xbe   :  { %899 = vmatpush.bf16.msra.mxu2 %v1689_v45  ;;  %925 = vmatpush.bf16.msrb.mxu0 %v1693_v50  ;;  %v1897_v45 = vor.u32 %v2109_v36, %v1896_v35  ;;  %v2107_v50 = vld [vmem:[#allocation8 + $0x3c4] sm:$0xf0]  ;;  %v1829_v29 = vor.u32 %v2090_v25, %v1826_v26  ;;  %v2089_v35 = vld [vmem:[#allocation8 + $0x334] sm:$0xf0]  ;;  %v2088_v36 = vld [vmem:[#allocation8 + $0x334] sm:$0xf] }
  0xbf   :  { %v1889_v61 = vor.u32 %v2107_v50, %v1888_v47  ;;  %v2087_v47 = vld [vmem:[#allocation8 + $0x324] sm:$0xf0]  ;;  %v2086_v50 = vld [vmem:[#allocation8 + $0x324] sm:$0xf] }
  0xc0   :  { %v1813_v53 = vor.u32 %v2086_v50, %v1810_v52 }
  0xc1   :  { %913 = vmatpush.bf16.msra.mxu3 %v1745_v40  ;;  %939 = vmatpush.bf16.msrb.mxu1 %v1749_v42  ;;  %v2095_v40 = vld [vmem:[#allocation8 + $0x364] sm:$0xf0]  ;;  %v2094_v42 = vld [vmem:[#allocation8 + $0x364] sm:$0xf] }
  0xc2   :  { %900 = vmatpush.bf16.msra.mxu2 %v1681_v60  ;;  %926 = vmatpush.bf16.msrb.mxu0 %v1685_v62  ;;  %v1841_v41 = vor.u32 %v2095_v40, %v1840_v39  ;;  %v1845_v46 = vor.u32 %v2094_v42, %v1842_v43  ;;  %v474_v62 = vperm.slane %v471_v44, 1  ;;  %v1821_v39 = vor.u32 %v2088_v36, %v1818_v38  ;;  %v1864_v40 = vld [vmem:[#allocation8 + $0x390] sm:$0xf]  ;;  %v2100_v43 = vld [vmem:[#allocation8 + $0x394] sm:$0xf]  ;;  %v2124_v36 = vld [vmem:[#allocation11 + $0x50] sm:$0xff] }
  0xc3   :  { %v2123_v38 = vld [vmem:[#allocation11 + $0x48] sm:$0xff] }
  0xc5   :  { %914 = vmatpush.bf16.msra.mxu3 %v1737_v54  ;;  %940 = vmatpush.bf16.msrb.mxu1 %v1741_v56  ;;  %v2092_v54 = vld [vmem:[#allocation8 + $0x354] sm:$0xf]  ;;  %v2106_v56 = vld [vmem:[#allocation8 + $0x3c4] sm:$0xf] }
  0xc6   :  { %v1837_v60 = vor.u32 %v2092_v54, %v1834_v58  ;;  %v1856_v54 = vld [vmem:[#allocation8 + $0x380] sm:$0xf]  ;;  %v1858_v58 = vld [vmem:[#allocation8 + $0x388] sm:$0xf0] }
 0x128   :  { %v416_v2 = vpop.f32.mrf.mxu0 }
 0x129   :  { %v417_v3 = vadd.f32 %v416_v2, %v218_v1  ;;  %v429_v4 = vpop.f32.mrf.mxu1  ;;  %v1729_v1 = vor.u32 %v2067_v0, %v1728_v63  ;;  %v2066_v2 = vld [vmem:[#allocation8 + $0x284] sm:$0xf]  ;;  %v1893_v63 = vor.u32 %v2106_v56, %v1890_v57 }
 0x12a   :  { %v2098_v56 = vld [vmem:[#allocation8 + $0x384] sm:$0xf] }
 0x12b   :  { %v430_v5 = vadd.f32 %v429_v4, %v417_v3  ;;  %v1730_v3 = vld [vmem:[#allocation8 + $0x288] sm:$0xf0]  ;;  %915 = vmatpush.bf16.msra.mxu3 %v1729_v1 }
 0x12c   :  { %v1733_v4 = vor.u32 %v2066_v2, %v1730_v3 }
 0x12d   :  { %v434_v7 = vmax.f32 %v430_v5, 0.0  ;;  %v1672_v5 = vld [vmem:[#allocation8 + $0x210] sm:$0xf] }
 0x12e   :  { %v390_v8 = vpop.f32.mrf.mxu2  ;;  %941 = vmatpush.bf16.msrb.mxu1 %v1733_v4 }
 0x12f   :  { %v436_v9 = vpack.c.bf16 %v434_v7, %v434_v7  ;;  %v391_v10 = vadd.f32 %v390_v8, %v217_v6  ;;  %v403_v11 = vpop.f32.mrf.mxu3  ;;  %v2053_v6 = vld [vmem:[#allocation8 + $0x214] sm:$0xf0]  ;;  %v2052_v7 = vld [vmem:[#allocation8 + $0x214] sm:$0xf] }
 0x130   :  { %v418_v12 = vpop.f32.mrf.mxu0  ;;  %v1673_v8 = vor.u32 %v2053_v6, %v1672_v5  ;;  %v473_v5 = vperm.slane %v471_v44, 0  ;;  %v1866_v44 = vld [vmem:[#allocation8 + $0x398] sm:$0xf0] }
 0x131   :  { %v404_v13 = vadd.f32 %v403_v11, %v391_v10  ;;  %v431_v14 = vpop.f32.mrf.mxu1  ;;  %658 = vmatmul.bf16.vlgmr.msrb.gmra.mxu3 %v436_v9  ;;  %684 = vmatmul.bf16.vlgmr.msra.gmra.mxu1 %v436_v9  ;;  %v1674_v9 = vld [vmem:[#allocation8 + $0x218] sm:$0xf0]  ;;  %v1664_v11 = vld [vmem:[#allocation8 + $0x200] sm:$0xf]  ;;  %v2051_v12 = vld [vmem:[#allocation8 + $0x204] sm:$0xf0] }
 0x132   :  { %v1677_v10 = vor.u32 %v2052_v7, %v1674_v9  ;;  %901 = vmatpush.bf16.msra.mxu2 %v1673_v8  ;;  %v1665_v14 = vor.u32 %v2051_v12, %v1664_v11  ;;  %1190 = vmatpush.bf16.msra.mxu1 %v1917_v24  ;;  %v2091_v24 = vld [vmem:[#allocation8 + $0x344] sm:$0xf0] }
 0x133   :  { %v433_v15 = vmax.f32 %v404_v13, 0.0  ;;  %v2050_v13 = vld [vmem:[#allocation8 + $0x204] sm:$0xf] }
 0x134   :  { %927 = vmatpush.bf16.msrb.mxu0 %v1677_v10 }
 0x135   :  { %v435_v16 = vpack.c.bf16 %v433_v15, %v433_v15  ;;  %v1666_v15 = vld [vmem:[#allocation8 + $0x208] sm:$0xf0] }
 0x136   :  { %v392_v17 = vpop.f32.mrf.mxu2  ;;  %902 = vmatpush.bf16.msra.mxu2 %v1665_v14  ;;  %1191 = vmatpush.bf16.msra.mxu1 %v1909_v32  ;;  %v1874_v32 = vld [vmem:[#allocation8 + $0x3a8] sm:$0xf0] }
 0x137   :  { %v405_v18 = vpop.f32.mrf.mxu3  ;;  %645 = vmatmul.bf16.vlgmr.msrb.gmra.mxu2 %v435_v16  ;;  %671 = vmatmul.bf16.vlgmr.msra.gmra.mxu0 %v435_v16  ;;  %v1669_v16 = vor.u32 %v2050_v13, %v1666_v15  ;;  %v1912_v17 = vld [vmem:[#allocation8 + $0x3f0] sm:$0xf] }
 0x138   :  { %v2113_v18 = vld [vmem:[#allocation8 + $0x3f4] sm:$0xf0] }
 0x139   :  { %928 = vmatpush.bf16.msrb.mxu0 %v1669_v16  ;;  %v1913_v20 = vor.u32 %v2113_v18, %v1912_v17  ;;  %v1880_v17 = vld [vmem:[#allocation8 + $0x3b0] sm:$0xf]  ;;  %v2105_v18 = vld [vmem:[#allocation8 + $0x3b4] sm:$0xf0] }
 0x13a   :  { %1151 = vmatpush.bf16.msrb.mxu2 %v1849_v33  ;;  %1192 = vmatpush.bf16.msra.mxu1 %v1901_v51  ;;  %v1877_v33 = vor.u32 %v2102_v31, %v1874_v32 }
 0x13b   :  { %1164 = vmatpush.bf16.msrb.mxu3 %v1913_v20  ;;  %v1881_v20 = vor.u32 %v2105_v18, %v1880_v17 }
 0x13d   :  { %1177 = vmatpush.bf16.msra.mxu0 %v1853_v34  ;;  %v1816_v34 = vld [vmem:[#allocation8 + $0x330] sm:$0xf] }
 0x13e   :  { %1152 = vmatpush.bf16.msrb.mxu2 %v1841_v41  ;;  %1193 = vmatpush.bf16.msra.mxu1 %v1893_v63  ;;  %v1817_v37 = vor.u32 %v2089_v35, %v1816_v34  ;;  %v2101_v41 = vld [vmem:[#allocation8 + $0x394] sm:$0xf0]  ;;  %v2084_v63 = vld [vmem:[#allocation8 + $0x314] sm:$0xf]  ;;  %v2125_v34 = vld [vmem:[#allocation11 + $0x58] sm:$0xff] }
 0x13f   :  { %1165 = vmatpush.bf16.msrb.mxu3 %v1905_v28  ;;  %v2103_v28 = vld [vmem:[#allocation8 + $0x3a4] sm:$0xf0]  ;;  %v1865_v42 = vor.u32 %v2101_v41, %v1864_v40  ;;  %v2115_v41 = vld [vmem:[#allocation11 + $0x8] sm:$0xff] }
 0x140   :  { %v1873_v30 = vor.u32 %v2103_v28, %v1872_v27  ;;  %v2118_v35 = vld [vmem:[#allocation11 + $0x20] sm:$0xff] }
 0x141   :  { %1178 = vmatpush.bf16.msra.mxu0 %v1845_v46  ;;  %v1808_v46 = vld [vmem:[#allocation8 + $0x320] sm:$0xf]  ;;  %v2122_v40 = vld [vmem:[#allocation11 + $0x40] sm:$0xff] }
 0x142   :  { %1153 = vmatpush.bf16.msrb.mxu2 %v1833_v59  ;;  %1194 = vmatpush.bf16.msra.mxu1 %v1885_v22  ;;  %v1809_v51 = vor.u32 %v2087_v47, %v1808_v46  ;;  %v1861_v59 = vor.u32 %v2098_v56, %v1858_v58 }
 0x143   :  { %1166 = vmatpush.bf16.msrb.mxu3 %v1897_v45  ;;  %v1869_v45 = vor.u32 %v2100_v43, %v1866_v44  ;;  %v985_v44 = vld [vmem:[#allocation10 + $0x6] sm:$0x3] }
 0x145   :  { %1179 = vmatpush.bf16.msra.mxu0 %v1837_v60  ;;  %v1800_v60 = vld [vmem:[#allocation8 + $0x310] sm:$0xf] }
 0x146   :  { %1195 = vmatpush.bf16.msra.mxu1 %v1877_v33  ;;  %v2119_v33 = vld [vmem:[#allocation11 + $0x28] sm:$0xff] }
 0x147   :  { %1167 = vmatpush.bf16.msrb.mxu3 %v1889_v61  ;;  %v2085_v61 = vld [vmem:[#allocation8 + $0x314] sm:$0xf0] }
 0x149   :  { %1180 = vmatpush.bf16.msra.mxu0 %v1829_v29 }
 0x14a   :  { %1196 = vmatpush.bf16.msra.mxu1 %v1869_v45  ;;  %v988_v45 = vperm.slane %v985_v44, 1 }
 0x14b   :  { %1168 = vmatpush.bf16.msrb.mxu3 %v1881_v20 }
 0x14d   :  { %1181 = vmatpush.bf16.msra.mxu0 %v1821_v39  ;;  %v2116_v39 = vld [vmem:[#allocation11 + $0x10] sm:$0xff] }
 0x14e   :  { %1197 = vmatpush.bf16.msra.mxu1 %v1861_v59 }
 0x14f   :  { %1169 = vmatpush.bf16.msrb.mxu3 %v1873_v30 }
 0x151   :  { %1182 = vmatpush.bf16.msra.mxu0 %v1813_v53  ;;  %v987_v53 = vperm.slane %v985_v44, 0 }
 0x153   :  { %1170 = vmatpush.bf16.msrb.mxu3 %v1865_v42  ;;  %v2114_v42 = vld [vmem:[#allocation11] sm:$0xff] }
 0x1ae   :  { %v685_v55 = vpop.f32.mrf.mxu1 }
 0x1b4   :  { %v659_v0 = vpop.f32.mrf.mxu3  ;;  %v672_v1 = vpop.f32.mrf.mxu0 }
 0x1b5   :  { %v673_v2 = vadd.f32 %v672_v1, %v474_v62  ;;  %v1801_v62 = vor.u32 %v2085_v61, %v1800_v60 }
 0x1b6   :  { %v687_v3 = vpop.f32.mrf.mxu1 }
 0x1b7   :  { %v686_v4 = vadd.f32 %v685_v55, %v673_v2  ;;  %v2099_v55 = vld [vmem:[#allocation8 + $0x384] sm:$0xf0]  ;;  %v1792_v2 = vld [vmem:[#allocation8 + $0x300] sm:$0xf] }
 0x1b8   :  { %v1857_v57 = vor.u32 %v2099_v55, %v1856_v54  ;;  %v2083_v3 = vld [vmem:[#allocation8 + $0x304] sm:$0xf0] }
 0x1b9   :  { %v690_v6 = vadd.f32 %v686_v4, %v2397_v49  ;;  %v2082_v4 = vld [vmem:[#allocation8 + $0x304] sm:$0xf] }
 0x1ba   :  { %v646_v7 = vpop.f32.mrf.mxu2  ;;  %1171 = vmatpush.bf16.msrb.mxu3 %v1857_v57 }
 0x1bb   :  { %v2404_v8 = vmax.f32 %v690_v6, 0.0  ;;  %v647_v9 = vadd.f32 %v646_v7, %v473_v5  ;;  %v1793_v5 = vor.u32 %v2083_v3, %v1792_v2  ;;  %v1794_v6 = vld [vmem:[#allocation8 + $0x308] sm:$0xf0]  ;;  %v2143_v3 = vld [vmem:[%s2427_s6] ss:$0 sm:$0xff] }
 0x1bc   :  { %v661_v10 = vpop.f32.mrf.mxu3  ;;  %v674_v11 = vpop.f32.mrf.mxu0  ;;  %v1797_v7 = vor.u32 %v2082_v4, %v1794_v6 }
 0x1bd   :  { %v694_v12 = vpack.c.bf16 %v2404_v8, %v2404_v8  ;;  %v660_v13 = vadd.f32 %v659_v0, %v647_v9  ;;  %v1802_v0 = vld [vmem:[#allocation8 + $0x318] sm:$0xf0]  ;;  %v2129_v9 = vld [vmem:[#allocation11 + $0x78] sm:$0xff] }
 0x1be   :  { %v1805_v1 = vor.u32 %v2084_v63, %v1802_v0  ;;  %v2121_v10 = vld [vmem:[#allocation11 + $0x38] sm:$0xff]  ;;  %v2128_v11 = vld [vmem:[#allocation11 + $0x70] sm:$0xff] }
 0x1bf   :  { %v689_v14 = vadd.f32 %v660_v13, %v2395_v48  ;;  %916 = vmatmul.bf16.vlgmr.msra.gmra.mxu3 %v694_v12  ;;  %942 = vmatmul.bf16.vlgmr.msrb.gmra.mxu1 %v694_v12  ;;  %v1825_v48 = vor.u32 %v2091_v24, %v1824_v23  ;;  %v2120_v12 = vld [vmem:[#allocation11 + $0x30] sm:$0xff]  ;;  %v2127_v13 = vld [vmem:[#allocation11 + $0x68] sm:$0xff] }
 0x1c0   :  { %1183 = vmatpush.bf16.msra.mxu0 %v1805_v1  ;;  %1354 = vmatpush.bf16.msra.mxu3 %v2129_v9 }
 0x1c1   :  { %v2409_v15 = vmax.f32 %v689_v14, 0.0  ;;  %1154 = vmatpush.bf16.msrb.mxu2 %v1825_v48  ;;  %v2126_v14 = vld [vmem:[#allocation11 + $0x60] sm:$0xff] }
 0x1c2   :  { %v648_v16 = vpop.f32.mrf.mxu2 }
 0x1c3   :  { %v693_v49 = vpack.c.bf16 %v2409_v15, %v2409_v15 }
 0x1c4   :  { %1184 = vmatpush.bf16.msra.mxu0 %v1797_v7  ;;  %1355 = vmatpush.bf16.msra.mxu3 %v2128_v11 }
 0x1c5   :  { %903 = vmatmul.bf16.vlgmr.msra.gmra.mxu2 %v693_v49  ;;  %929 = vmatmul.bf16.vlgmr.msrb.gmra.mxu0 %v693_v49  ;;  %v729_v49 = vld [vmem:[#allocation10 + $0x4] sm:$0x3] }
 0x1c6   :  { %1155 = vmatpush.bf16.msrb.mxu2 %v1817_v37  ;;  %v732_v17 = vperm.slane %v729_v49, 1  ;;  %v731_v23 = vperm.slane %v729_v49, 0  ;;  %v2117_v37 = vld [vmem:[#allocation11 + $0x18] sm:$0xff] }
 0x1c8   :  { %1356 = vmatpush.bf16.msra.mxu3 %v2127_v13 }
 0x1ca   :  { %1156 = vmatpush.bf16.msrb.mxu2 %v1809_v51 }
 0x1cc   :  { %1357 = vmatpush.bf16.msra.mxu3 %v2126_v14 }
 0x1ce   :  { %1157 = vmatpush.bf16.msrb.mxu2 %v1801_v62 }
 0x1d0   :  { %1358 = vmatpush.bf16.msra.mxu3 %v2125_v34 }
 0x1d2   :  { %1158 = vmatpush.bf16.msrb.mxu2 %v1793_v5 }
 0x1d4   :  { %1359 = vmatpush.bf16.msra.mxu3 %v2124_v36 }
 0x1d6   :  { %1341 = vmatpush.bf16.msra.mxu2 %v2121_v10 }
 0x1d8   :  { %1360 = vmatpush.bf16.msra.mxu3 %v2123_v38 }
 0x1da   :  { %1342 = vmatpush.bf16.msra.mxu2 %v2120_v12 }
 0x1dc   :  { %1361 = vmatpush.bf16.msra.mxu3 %v2122_v40 }
 0x1de   :  { %1343 = vmatpush.bf16.msra.mxu2 %v2119_v33 }
 0x1e2   :  { %1344 = vmatpush.bf16.msra.mxu2 %v2118_v35 }
 0x1e6   :  { %1345 = vmatpush.bf16.msra.mxu2 %v2117_v37 }
 0x1ea   :  { %1346 = vmatpush.bf16.msra.mxu2 %v2116_v39 }
 0x1ee   :  { %1347 = vmatpush.bf16.msra.mxu2 %v2115_v41 }
 0x1f2   :  { %1348 = vmatpush.bf16.msra.mxu2 %v2114_v42 }
 0x23c   :  { %v943_v16 = vpop.f32.mrf.mxu1 }
 0x242   :  { %v917_v18 = vpop.f32.mrf.mxu3  ;;  %v930_v19 = vpop.f32.mrf.mxu0 }
 0x243   :  { %v931_v20 = vadd.f32 %v930_v19, %v732_v17 }
 0x244   :  { %v945_v21 = vpop.f32.mrf.mxu1 }
 0x245   :  { %v944_v22 = vadd.f32 %v943_v16, %v931_v20 }
 0x247   :  { %v948_v24 = vmax.f32 %v944_v22, 0.0 }
 0x248   :  { %v904_v25 = vpop.f32.mrf.mxu2 }
 0x249   :  { %v950_v48 = vpack.c.bf16 %v948_v24, %v948_v24  ;;  %v905_v26 = vadd.f32 %v904_v25, %v731_v23 }
 0x24a   :  { %v919_v27 = vpop.f32.mrf.mxu3  ;;  %v932_v28 = vpop.f32.mrf.mxu0 }
 0x24b   :  { %v918_v29 = vadd.f32 %v917_v18, %v905_v26  ;;  %1172 = vmatmul.bf16.vlgmr.msrb.gmra.mxu3 %v950_v48  ;;  %1198 = vmatmul.bf16.vlgmr.msra.gmra.mxu1 %v950_v48 }
 0x24d   :  { %v947_v30 = vmax.f32 %v918_v29, 0.0 }
 0x24f   :  { %v949_v31 = vpack.c.bf16 %v947_v30, %v947_v30 }
 0x250   :  { %v906_v32 = vpop.f32.mrf.mxu2 }
 0x251   :  { %1159 = vmatmul.bf16.vlgmr.msrb.gmra.mxu2 %v949_v31  ;;  %1185 = vmatmul.bf16.vlgmr.msra.gmra.mxu0 %v949_v31 }
 0x2c8   :  { %v1199_v43 = vpop.f32.mrf.mxu1 }
 0x2ce   :  { %v1173_v46 = vpop.f32.mrf.mxu3  ;;  %v1186_v47 = vpop.f32.mrf.mxu0 }
 0x2cf   :  { %v1187_v50 = vadd.f32 %v1186_v47, %v988_v45 }
 0x2d0   :  { %v1201_v51 = vpop.f32.mrf.mxu1 }
 0x2d1   :  { %v1200_v52 = vadd.f32 %v1199_v43, %v1187_v50 }
 0x2d3   :  { %v1204_v54 = vadd.f32 %v1200_v52, %v2404_v8 }
 0x2d4   :  { %v1160_v55 = vpop.f32.mrf.mxu2 }
 0x2d5   :  { %v1206_v56 = vmax.f32 %v1204_v54, 0.0  ;;  %v1161_v57 = vadd.f32 %v1160_v55, %v987_v53 }
 0x2d6   :  { %v1175_v58 = vpop.f32.mrf.mxu3  ;;  %v1188_v59 = vpop.f32.mrf.mxu0 }
 0x2d7   :  { %v1208_v60 = vpack.c.bf16 %v1206_v56, %v1206_v56  ;;  %v1174_v61 = vadd.f32 %v1173_v46, %v1161_v57 }
 0x2d9   :  { %v1203_v62 = vadd.f32 %v1174_v61, %v2409_v15  ;;  %1362 = vmatmul.bf16.vlgmr.msra.gmra.mxu3 %v1208_v60 }
 0x2db   :  { %v1205_v63 = vmax.f32 %v1203_v62, 0.0 }
 0x2dc   :  { %v1162_v0 = vpop.f32.mrf.mxu2 }
 0x2dd   :  { %v1207_v1 = vpack.c.bf16 %v1205_v63, %v1205_v63 }
 0x2df   :  { %1349 = vmatmul.bf16.vlgmr.msra.gmra.mxu2 %v1207_v1 }
 0x35c   :  { %v1363_v2 = vpop.f32.mrf.mxu3 }
 0x362   :  { %v1350_v8 = vpop.f32.mrf.mxu2 }
 0x363   :  { %v1351_v4 = vadd.f32 %v2143_v3, %v1350_v8 }
 0x364   :  { %v1365_v5 = vpop.f32.mrf.mxu3 }
 0x365   :  { %v1364_v15 = vadd.f32 %v1363_v2, %v1351_v4 }
 0x367   :  { %1367 = vst [vmem:[#allocation13] sm:$0xff] %v1364_v15 }
 0x368   :  { %1378 = dma.vmem_to_hbm [thread:$0]  %s1374_s11, 128, %s1376_s14, [#allocation4]  }
 0x36a   :  { %v1352_v6 = vpop.f32.mrf.mxu2 }
 0x36b   :  { %2320 = dma.done.wait [#allocation4], 128  }
 0x36c   :  { %2321 = vsyncadd [#allocation4], 4294967168 }
 0x36d   :  { %1383 = vsyncpa [#allocation3], 1 }
 0x36e   :  { %1384 = vsyncpa [#allocation6], 1 }
 0x36f   :  { %1385 = vsyncpa [#allocation9], 1 }
 0x370   :  { %1386 = vsyncpa [#allocation12], 1 }
 0x371   :  { %1387 = vsyncpa [#allocation4], 1 }

</bundles_post_ra>
